<compile_context>
chip_gen: v6e
topology: v6e:2x2x1
jax: 0.10.0
libtpu: 0.0.40
codegen_flags: <defaults>
</compile_context>

<pallas_src>
import math

import jax
import jax.numpy as jnp
from jax import lax
from jax.experimental import pallas as pl
from jax.experimental.pallas import tpu as pltpu

DIST_THRESH = 1.0   # stand-in for config.dist_thresh
ALPHA = 0.2         # LeakyReLU negative slope
NEG_BIG = -9e15     # matches -9000000000000000.0 in the reference


def gat_head_kernel(q_ref, k_ref, mask_ref, a2_ref, out_ref, m_sc, l_sc, acc_sc):
    """One (TQ query rows) x (TK key cols) tile of the GAT head, online softmax."""
    kk = pl.program_id(1)

    @pl.when(kk == 0)
    def _init():
        m_sc[...] = jnp.full_like(m_sc, -jnp.inf)
        l_sc[...] = jnp.zeros_like(l_sc)
        acc_sc[...] = jnp.zeros_like(acc_sc)

    q = q_ref[...]                       # (TQ, dim) f32 — resident across the k axis
    kn = k_ref[...]                      # (TK, dim) f32 — keys == values == nodes
    keep = mask_ref[...]                 # (TQ, TK) int8, 1 = dist < thresh
    a2 = a2_ref[...]                     # (2, dim) f32: row0 = a[:dim], row1 = a[dim:]

    # e[i, j] = nodes[i]·a_src + nodes[j]·a_dst   (factorization of a_input @ a)
    f_src = lax.dot_general(
        q, a2[0:1, :], dimension_numbers=(((1,), (1,)), ((), ())),
        preferred_element_type=jnp.float32)                      # (TQ, 1)
    f_dst = lax.dot_general(
        a2[1:2, :], kn, dimension_numbers=(((1,), (1,)), ((), ())),
        preferred_element_type=jnp.float32)                      # (1, TK) — row, no transpose

    e = f_src + f_dst                                            # (TQ, TK)
    e = jnp.where(e > 0, e, ALPHA * e)                           # LeakyReLU(alpha)
    s = jnp.where(keep != 0, e, jnp.float32(NEG_BIG))            # distance mask

    # Online softmax update.
    m_prev = m_sc[...]
    m_new = jnp.maximum(m_prev, jnp.max(s, axis=1, keepdims=True))
    corr = jnp.exp(m_prev - m_new)
    p = jnp.exp(s - m_new)                                       # (TQ, TK)
    l_sc[...] = corr * l_sc[...] + jnp.sum(p, axis=1, keepdims=True)
    acc_sc[...] = corr * acc_sc[...] + jnp.dot(
        p, kn, preferred_element_type=jnp.float32)               # (TQ, dim)
    m_sc[...] = m_new

    @pl.when(kk == pl.num_programs(1) - 1)
    def _finalize():
        out_ref[...] = (acc_sc[...] *
                        pl.reciprocal(l_sc[...], approx=True)).astype(out_ref.dtype)


def gat_head(nodes, dist, a, *, tq=128, tk=128, dist_thresh=DIST_THRESH):
    N, dim = nodes.shape
    assert a.shape == (2 * dim, 1)

    # Fall back to a single full block along an axis if the tile doesn't divide N.
    tq = tq if N % tq == 0 else N
    tk = tk if N % tk == 0 else N
    grid = (N // tq, N // tk)

    # Precompute the mask in f32 on the host side of the kernel: bit-exact vs the
    # reference and 4x less HBM traffic than streaming f32 dist.
    mask = (dist < jnp.float32(dist_thresh)).astype(jnp.int8)    # (N, N) int8
    a2 = a.reshape(2, dim)                                       # (2, dim) lane-dense

    return pl.pallas_call(
        gat_head_kernel,
        out_shape=jax.ShapeDtypeStruct((N, dim), jnp.float32),
        grid_spec=pltpu.PrefetchScalarGridSpec(
            num_scalar_prefetch=0,
            grid=grid,
            in_specs=[
                pl.BlockSpec((tq, dim), lambda i, k: (i, 0)),    # query node tile
                pl.BlockSpec((tk, dim), lambda i, k: (k, 0)),    # key/value node tile
                pl.BlockSpec((tq, tk), lambda i, k: (i, k)),     # int8 mask tile stream
                pl.BlockSpec((2, dim), lambda i, k: (0, 0)),     # attention vector a
            ],
            out_specs=pl.BlockSpec((tq, dim), lambda i, k: (i, 0)),
            scratch_shapes=[
                pltpu.VMEM((tq, 1), jnp.float32),                # running max m
                pltpu.VMEM((tq, 1), jnp.float32),                # running denom l
                pltpu.VMEM((tq, dim), jnp.float32),              # accumulator
            ],
        ),
        compiler_params=pltpu.CompilerParams(
            dimension_semantics=("parallel", "arbitrary"),
            vmem_limit_bytes=32 * 1024 * 1024,
        ),
    )(nodes, nodes, mask, a2)


def reference(nodes, dist, a):
    # Pure-JAX reference mirroring the PyTorch forward exactly.
    N, dim = nodes.shape
    left = jnp.tile(nodes, (1, N)).reshape(N * N, dim)
    right = jnp.tile(nodes, (N, 1))
    a_input = jnp.concatenate([left, right], axis=1).reshape(N, N, 2 * dim)
    e = jnp.squeeze(a_input @ a, axis=2)
    e = jnp.where(e > 0, e, ALPHA * e)
    att = jnp.where(dist < DIST_THRESH, e, jnp.float32(NEG_BIG))
    att = jax.nn.softmax(att, axis=1)
    return att @ nodes


if __name__ == "__main__":
    # Small but multi-tile: grid = (2 query tiles, 2 key tiles) at 128x128 tiles.
    N, dim = 256, 32

    key = jax.random.PRNGKey(0)
    k_nodes, k_dist, k_a = jax.random.split(key, 3)

    nodes = jax.random.normal(k_nodes, (N, dim), dtype=jnp.float32)
    dist = jax.random.uniform(k_dist, (N, N), dtype=jnp.float32, minval=0.0, maxval=2.0)
    # Guarantee at least one unmasked neighbor per row (self-distance 0).
    dist = dist.at[jnp.arange(N), jnp.arange(N)].set(0.0)

    # Xavier-uniform init for a (2*dim, 1), gain=1.414 (deterministic).
    bound = 1.414 * math.sqrt(6.0 / (2 * dim + 1))
    a = jax.random.uniform(k_a, (2 * dim, 1), dtype=jnp.float32,
                           minval=-bound, maxval=bound)

    out = gat_head(nodes, dist, a)
    jax.block_until_ready(out)

    ref = reference(nodes, dist, a)
    assert out.shape == (N, dim)
    # Tolerance loosened slightly for approx reciprocal + online-softmax reordering.
    assert jnp.allclose(out, ref, atol=5e-3, rtol=5e-3), "mismatch vs reference"

    print("KERNEL_OK")
</pallas_src>

<mosaic_0001>
module attributes {stable_mosaic.version = 11 : i64} {
  func.func @gat_head_kernel(%arg0: i32, %arg1: i32, %arg2: memref<128x32xf32, #tpu.memory_space<vmem>>, %arg3: memref<128x32xf32, #tpu.memory_space<vmem>>, %arg4: memref<128x128xi8, #tpu.memory_space<vmem>>, %arg5: memref<2x32xf32, #tpu.memory_space<vmem>>, %arg6: memref<128x32xf32, #tpu.memory_space<vmem>>, %arg7: memref<128x1xf32, #tpu.memory_space<vmem>>, %arg8: memref<128x1xf32, #tpu.memory_space<vmem>>, %arg9: memref<128x32xf32, #tpu.memory_space<vmem>>) attributes {dimension_semantics = [#tpu.dimension_semantics<parallel>, #tpu.dimension_semantics<arbitrary>], iteration_bounds = array<i64: 2, 2>, scalar_prefetch = 0 : i64, scratch_operands = 3 : i64, tpu.core_type = #tpu.core_type<tc>, window_params = [{transform_indices = @transform_0, window_bounds = array<i64: 128, 32>}, {transform_indices = @transform_1, window_bounds = array<i64: 128, 32>}, {transform_indices = @transform_2, window_bounds = array<i64: 128, 128>}, {pipeline_mode = #tpu.pipeline_mode<synchronous>, transform_indices = @transform_3, window_bounds = array<i64: 2, 32>}, {transform_indices = @transform_4, window_bounds = array<i64: 128, 32>}]} {
    %c0_i32 = arith.constant 0 : i32
    %0 = arith.cmpi eq, %arg1, %c0_i32 : i32
    %1 = arith.extui %0 : i1 to i32
    %c0_i32_0 = arith.constant 0 : i32
    %2 = arith.cmpi ne, %1, %c0_i32_0 : i32
    scf.if %2 {
      %cst_28 = arith.constant 0xFF800000 : f32
      %48 = vector.broadcast %cst_28 : f32 to vector<128x1xf32>
      %c0_29 = arith.constant 0 : index
      %c0_30 = arith.constant 0 : index
      %49 = vector.load %arg7[%c0_29, %c0_30] : memref<128x1xf32, #tpu.memory_space<vmem>>, vector<128x1xf32>
      tpu.vector_store %arg7[%c0_29, %c0_30], %48 {strides = array<i32>} : memref<128x1xf32, #tpu.memory_space<vmem>>, vector<128x1xf32>,
      %cst_31 = arith.constant 0.000000e+00 : f32
      %50 = vector.broadcast %cst_31 : f32 to vector<128x1xf32>
      %c0_32 = arith.constant 0 : index
      %c0_33 = arith.constant 0 : index
      %51 = vector.load %arg8[%c0_32, %c0_33] : memref<128x1xf32, #tpu.memory_space<vmem>>, vector<128x1xf32>
      tpu.vector_store %arg8[%c0_32, %c0_33], %50 {strides = array<i32>} : memref<128x1xf32, #tpu.memory_space<vmem>>, vector<128x1xf32>,
      %cst_34 = arith.constant 0.000000e+00 : f32
      %52 = vector.broadcast %cst_34 : f32 to vector<128x32xf32>
      %c0_35 = arith.constant 0 : index
      %c0_36 = arith.constant 0 : index
      %53 = vector.load %arg9[%c0_35, %c0_36] : memref<128x32xf32, #tpu.memory_space<vmem>>, vector<128x32xf32>
      tpu.vector_store %arg9[%c0_35, %c0_36], %52 {strides = array<i32>} : memref<128x32xf32, #tpu.memory_space<vmem>>, vector<128x32xf32>,
    } else {
    }
    %c0 = arith.constant 0 : index
    %c0_1 = arith.constant 0 : index
    %3 = vector.load %arg2[%c0, %c0_1] : memref<128x32xf32, #tpu.memory_space<vmem>>, vector<128x32xf32>
    %c0_2 = arith.constant 0 : index
    %c0_3 = arith.constant 0 : index
    %4 = vector.load %arg3[%c0_2, %c0_3] : memref<128x32xf32, #tpu.memory_space<vmem>>, vector<128x32xf32>
    %c0_4 = arith.constant 0 : index
    %c0_5 = arith.constant 0 : index
    %5 = vector.load %arg4[%c0_4, %c0_5] : memref<128x128xi8, #tpu.memory_space<vmem>>, vector<128x128xi8>
    %c0_6 = arith.constant 0 : index
    %c0_7 = arith.constant 0 : index
    %6 = vector.load %arg5[%c0_6, %c0_7] : memref<2x32xf32, #tpu.memory_space<vmem>>, vector<2x32xf32>
    %7 = vector.extract_strided_slice %6 {offsets = [0, 0], sizes = [1, 32], strides = [1, 1]} : vector<2x32xf32> to vector<1x32xf32>
    %cst = arith.constant dense<0.000000e+00> : vector<128x1xf32>
    %8 = tpu.matmul %3, %7, %cst {dimension_numbers = #tpu.dot_dimension_numbers<[1], [1], [0], [0], [0, 0, 1, 0], [], []>} : vector<128x32xf32>, vector<1x32xf32>, vector<128x1xf32> -> vector<128x1xf32>
    %9 = vector.extract_strided_slice %6 {offsets = [1, 0], sizes = [1, 32], strides = [1, 1]} : vector<2x32xf32> to vector<1x32xf32>
    %cst_8 = arith.constant dense<0.000000e+00> : vector<1x128xf32>
    %10 = tpu.matmul %9, %4, %cst_8 {dimension_numbers = #tpu.dot_dimension_numbers<[1], [1], [0], [0], [0, 0, 1, 0], [], []>} : vector<1x32xf32>, vector<128x32xf32>, vector<1x128xf32> -> vector<1x128xf32>
    %11 = vector.broadcast %8 : vector<128x1xf32> to vector<128x128xf32>
    %12 = vector.broadcast %10 : vector<1x128xf32> to vector<128x128xf32>
    %13 = arith.addf %11, %12 : vector<128x128xf32>
    %cst_9 = arith.constant 0.000000e+00 : f32
    %14 = vector.broadcast %cst_9 : f32 to vector<128x128xf32>
    %15 = arith.cmpf ogt, %13, %14 : vector<128x128xf32>
    %cst_10 = arith.constant 2.000000e-01 : f32
    %16 = vector.broadcast %cst_10 : f32 to vector<128x128xf32>
    %17 = arith.mulf %16, %13 : vector<128x128xf32>
    %18 = arith.select %15, %13, %17 : vector<128x128xi1>, vector<128x128xf32>
    %c0_i8 = arith.constant 0 : i8
    %19 = vector.broadcast %c0_i8 : i8 to vector<128x128xi8>
    %20 = arith.cmpi ne, %5, %19 : vector<128x128xi8>
    %cst_11 = arith.constant -9.000000e+15 : f32
    %21 = vector.broadcast %cst_11 : f32 to vector<128x128xf32>
    %22 = arith.select %20, %18, %21 : vector<128x128xi1>, vector<128x128xf32>
    %c0_12 = arith.constant 0 : index
    %c0_13 = arith.constant 0 : index
    %23 = vector.load %arg7[%c0_12, %c0_13] : memref<128x1xf32, #tpu.memory_space<vmem>>, vector<128x1xf32>
    %cst_14 = arith.constant dense<0xFF800000> : vector<128xf32>
    %24 = vector.multi_reduction <maximumf>, %22, %cst_14 [1] : vector<128x128xf32> to vector<128xf32>
    %25 = vector.shape_cast %24 : vector<128xf32> to vector<128x1xf32>
    %26 = arith.maximumf %23, %25 : vector<128x1xf32>
    %27 = arith.subf %23, %26 : vector<128x1xf32>
    %28 = math.exp %27 : vector<128x1xf32>
    %29 = vector.broadcast %26 : vector<128x1xf32> to vector<128x128xf32>
    %30 = arith.subf %22, %29 : vector<128x128xf32>
    %31 = math.exp %30 : vector<128x128xf32>
    %c0_15 = arith.constant 0 : index
    %c0_16 = arith.constant 0 : index
    %32 = vector.load %arg8[%c0_15, %c0_16] : memref<128x1xf32, #tpu.memory_space<vmem>>, vector<128x1xf32>
    %33 = arith.mulf %28, %32 : vector<128x1xf32>
    %cst_17 = arith.constant dense<0.000000e+00> : vector<128xf32>
    %34 = vector.multi_reduction <add>, %31, %cst_17 [1] : vector<128x128xf32> to vector<128xf32>
    %35 = vector.shape_cast %34 : vector<128xf32> to vector<128x1xf32>
    %36 = arith.addf %33, %35 : vector<128x1xf32>
    %c0_18 = arith.constant 0 : index
    %c0_19 = arith.constant 0 : index
    %37 = vector.load %arg8[%c0_18, %c0_19] : memref<128x1xf32, #tpu.memory_space<vmem>>, vector<128x1xf32>
    tpu.vector_store %arg8[%c0_18, %c0_19], %36 {strides = array<i32>} : memref<128x1xf32, #tpu.memory_space<vmem>>, vector<128x1xf32>,
    %c0_20 = arith.constant 0 : index
    %c0_21 = arith.constant 0 : index
    %38 = vector.load %arg9[%c0_20, %c0_21] : memref<128x32xf32, #tpu.memory_space<vmem>>, vector<128x32xf32>
    %39 = vector.broadcast %28 : vector<128x1xf32> to vector<128x32xf32>
    %40 = arith.mulf %39, %38 : vector<128x32xf32>
    %cst_22 = arith.constant dense<0.000000e+00> : vector<128x32xf32>
    %41 = tpu.matmul %31, %4, %cst_22 {dimension_numbers = #tpu.dot_dimension_numbers<[1], [0], [0], [1], [0, 0, 1, 1], [], []>} : vector<128x128xf32>, vector<128x32xf32>, vector<128x32xf32> -> vector<128x32xf32>
    %42 = arith.addf %40, %41 : vector<128x32xf32>
    %c0_23 = arith.constant 0 : index
    %c0_24 = arith.constant 0 : index
    %43 = vector.load %arg9[%c0_23, %c0_24] : memref<128x32xf32, #tpu.memory_space<vmem>>, vector<128x32xf32>
    tpu.vector_store %arg9[%c0_23, %c0_24], %42 {strides = array<i32>} : memref<128x32xf32, #tpu.memory_space<vmem>>, vector<128x32xf32>,
    %c0_25 = arith.constant 0 : index
    %c0_26 = arith.constant 0 : index
    %44 = vector.load %arg7[%c0_25, %c0_26] : memref<128x1xf32, #tpu.memory_space<vmem>>, vector<128x1xf32>
    tpu.vector_store %arg7[%c0_25, %c0_26], %26 {strides = array<i32>} : memref<128x1xf32, #tpu.memory_space<vmem>>, vector<128x1xf32>,
    %c1_i32 = arith.constant 1 : i32
    %45 = arith.cmpi eq, %arg1, %c1_i32 : i32
    %46 = arith.extui %45 : i1 to i32
    %c0_i32_27 = arith.constant 0 : i32
    %47 = arith.cmpi ne, %46, %c0_i32_27 : i32
    scf.if %47 {
      %c0_28 = arith.constant 0 : index
      %c0_29 = arith.constant 0 : index
      %48 = vector.load %arg9[%c0_28, %c0_29] : memref<128x32xf32, #tpu.memory_space<vmem>>, vector<128x32xf32>
      %c0_30 = arith.constant 0 : index
      %c0_31 = arith.constant 0 : index
      %49 = vector.load %arg8[%c0_30, %c0_31] : memref<128x1xf32, #tpu.memory_space<vmem>>, vector<128x1xf32>
      %50 = tpu.reciprocal %49 {approx = true} : vector<128x1xf32> -> vector<128x1xf32>
      %51 = vector.broadcast %50 : vector<128x1xf32> to vector<128x32xf32>
      %52 = arith.mulf %48, %51 : vector<128x32xf32>
      %c0_32 = arith.constant 0 : index
      %c0_33 = arith.constant 0 : index
      %53 = vector.load %arg6[%c0_32, %c0_33] : memref<128x32xf32, #tpu.memory_space<vmem>>, vector<128x32xf32>
      tpu.vector_store %arg6[%c0_32, %c0_33], %52 {strides = array<i32>} : memref<128x32xf32, #tpu.memory_space<vmem>>, vector<128x32xf32>,
    } else {
    }
    return
  }
  func.func @transform_0(%arg0: i32, %arg1: i32) -> (i32, i32) {
    %c0_i32 = arith.constant 0 : i32
    %c0_i32_0 = arith.constant 0 : i32
    return %arg0, %c0_i32 : i32, i32
  }
  func.func @transform_1(%arg0: i32, %arg1: i32) -> (i32, i32) {
    %c0_i32 = arith.constant 0 : i32
    %c0_i32_0 = arith.constant 0 : i32
    return %arg1, %c0_i32 : i32, i32
  }
  func.func @transform_2(%arg0: i32, %arg1: i32) -> (i32, i32) {
    %c0_i32 = arith.constant 0 : i32
    return %arg0, %arg1 : i32, i32
  }
  func.func @transform_3(%arg0: i32, %arg1: i32) -> (i32, i32) {
    %c0_i32 = arith.constant 0 : i32
    %c0_i32_0 = arith.constant 0 : i32
    %c0_i32_1 = arith.constant 0 : i32
    return %c0_i32, %c0_i32_0 : i32, i32
  }
  func.func @transform_4(%arg0: i32, %arg1: i32) -> (i32, i32) {
    %c0_i32 = arith.constant 0 : i32
    %c0_i32_0 = arith.constant 0 : i32
    return %arg0, %c0_i32 : i32, i32
  }
}

</mosaic_0001>

<bundles_post_ra>
// kernel: tpu_custom_call.1
= control target key start
LH: loop header
LB: loop body
LE: loop exit
PB: predicated region body
PF: predicated region fallthrough
CT: control target
= control target key end

     0   :  { %s2129_s15 = smov 0   ;;  %s2131_s16 = smov 0   ;;  %s2943_s0 = inlined_call_operand.vmem [shape: f32[256,32], index: 0, kind: input, shape index: {}]   ;;  %s2944_s1 = inlined_call_operand.vmem [shape: f32[256,32], index: 1, kind: input, shape index: {}]   ;;  %s2945_s2 = inlined_call_operand.vmem [shape: s8[256,256], index: 2, kind: input, shape index: {}]   ;;  %s2946_s3 = inlined_call_operand.vmem [shape: f32[2,32], index: 3, kind: input, shape index: {}]   ;;  %s2947_s4 = inlined_call_operand.vmem [shape: f32[256,32], index: 4, kind: output, shape index: {}]  }
   0x1   :  { %s2133_s17 = smov 0   ;;  %s2135_s18 = smov 0  }
   0x2   :  { %s2137_s19 = smov 0   ;;  %s2139_s20 = smov 0  }
   0x3   :  { %s2141_s21 = smov 0  }
   0x4 LB: > { %s23_s22 = sadd.s32 1, %s2088_s19  ;;  %s26_s23 = sadd.s32 1, %s2092_s20  ;;  %s2096_s21 = sphi %s2141_s21, %s14_s21   ;;  %s2092_s20 = sphi %s2139_s20, %s2991_s20   ;;  %s2088_s19 = sphi %s2137_s19, %s2990_s19   ;;  %s2084_s18 = sphi %s2135_s18, %s2989_s18   ;;  %s2080_s17 = sphi %s2133_s17, %s2988_s17   ;;  %s2076_s16 = sphi %s2131_s16, %s2987_s16   ;;  %s2072_s15 = sphi %s2129_s15, %s2986_s15  }
   0x5   : > { %p24_p0 = scmp.ge.s32.totalorder %s23_s22, 2  ;;  %p94_p1 = scmp.ne.s32.totalorder %s2076_s16, %s2072_s15 }
   0x6   : > { %p95_p2 = scmp.eq.s32.totalorder %s2096_s21, 0  ;;  %s87_s27 = sadd.s32 1, %s2076_s16 }
   0x7   : > { %s2993_s22 = smov (%p24_p0, %s23_s22), 0  ;;  %s2995_s23 = smov (!%p24_p0, %s26_s23), %s2092_s20 }
   0x8   : > { %p96_p3 = por %p95_p2, %p94_p1  ;;  %p28_p4 = scmp.ge.s32.totalorder %s2995_s23, 2 }
   0x9   : > { %s83_s24 = ssub.s32 %s2088_s19, %s2993_s22  ;;  %p1705_p6 = scmp.ge.s32.totalorder %s2096_s21, 4 }
   0xa   : > { %s2997_s23 = smov (%p28_p4, %s2995_s23), 0 }
   0xb   : > { %s82_s25 = ssub.s32 %s2092_s20, %s2997_s23  ;;  %170 = sbr.rel (%p1705_p6) target bundleno = 24 (0x18), region = 20 }
   0xc   : > { %s84_s26 = sor.u32 %s83_s24, %s82_s25 }
   0xd   : > { %p85_p5 = scmp.eq.s32.totalorder %s84_s26, 0 }
   0xf   : > { %s2180_s28 = scalar_select %p85_p5, %s2076_s16, %s87_s27  }
  0x10   : > { %191 = sbr.rel (!%p96_p3) target bundleno = 24 (0x18), region = 32  ;;  %s193_s29 = sand.u32 (%p96_p3), 1, %s2076_s16  }
  0x11   : > { %s1739_s30 = sshll.u32 (%p96_p3), %s2092_s20, 3  ;;  %s1706_s5 = sshll.u32 (%p96_p3), %s193_s29, 5 }
  0x12   : > { %s198_s6 = sadd.s32 (%p96_p3), %s2088_s19, %s1739_s30  ;;  %s195_s11 = scalar_lea.vmem (%p96_p3), [#allocation5], %s1706_s5 }
  0x13   : > { %s1709_s7 = sshll.u32 (%p96_p3), %s198_s6, 3 }
  0x14   : > { %s200_s10 = scalar_lea.vmem (%p96_p3), %s2945_s2, %s1709_s7 }
  0x15   : > { %v235_v0 = vld [vmem:[%s200_s10] sm:$0xff]  ;;  %v237_v1 = vld [vmem:[%s200_s10 + $0x10] sm:$0xff] }
  0x16   : > { %v239_v2 = vld [vmem:[%s200_s10 + $0x20] sm:$0xff]  ;;  %236 = vst [vmem:[%s195_s11] sm:$0xff] %v235_v0  ;;  %238 = vst [vmem:[%s195_s11 + $0x8] sm:$0xff] %v237_v1  ;;  %v241_v3 = vld [vmem:[%s200_s10 + $0x30] sm:$0xff] }
  0x17   : > { %240 = vst [vmem:[%s195_s11 + $0x10] sm:$0xff] %v239_v2  ;;  %242 = vst [vmem:[%s195_s11 + $0x18] sm:$0xff] %v241_v3 }
  0x18 PF: > { %p1710_p7 = scmp.ge.s32.totalorder %s2096_s21, 1  ;;  %p247_p8 = scmp.lt.s32.totalorder %s2096_s21, 5 }
  0x1a   : > { %p248_p9 = pnand %p1710_p7, %p247_p8 }
  0x1b   : > { %s254_s12 = sand.u32 (!%p248_p9), 1, %s2072_s15   ;;  %s1712_s13 = sshll.u32 (!%p248_p9), %s2084_s18, 4 }
  0x1c   : > { %251 = sbr.rel (%p248_p9) target bundleno = 1024 (0x400), region = 70  ;;  %s1711_s14 = sshll.u32 (!%p248_p9), %s254_s12, 5 }
  0x1d   : > { %p290_p10 = scmp.lt.s32.totalorder (!%p248_p9), %s1712_s13, 31  ;;  %s1714_s24 = sshll.u32 (!%p248_p9), %s2080_s17, 4 }
  0x1e   : > { %p296_p11 = scmp.lt.s32.totalorder (!%p248_p9), %s1714_s24, 31  ;;  %s2209_s9 = scalar_lea.vmem (!%p248_p9), [#allocation5], %s1711_s14 }
  0x1f   : > { %p1718_p12 = scmp.ne.s32.totalorder (!%p248_p9), %s2080_s17, 0 }
  0x21   : > { %s2999_s13 = smov (!%p290_p10, %s1712_s13), 31  ;;  %s3001_s24 = smov (!%p296_p11, %s1714_s24), 31 }
  0x22   : > { %s1713_s25 = sshll.u32 %s2999_s13, 3  ;;  %s1715_s7 = sshll.u32 %s3001_s24, 3 }
  0x23   : > { %s2197_s29 = scalar_lea.vmem %s2943_s0, %s1713_s25  ;;  %s2202_s6 = scalar_lea.vmem %s2947_s4, %s1713_s25 }
  0x24   : > { %s2207_s8 = scalar_lea.vmem %s2944_s1, %s1715_s7  ;;  %313 = sbr.rel (%p1718_p12) target bundleno = 66 (0x42), region = 78 }
  0x29   : > { %vm314_vm0 = vcmask 7168   ;;  %vm347_vm1 = vcmask 261120   ;;  %v2098_v4 = vmov -inf   ;;  %v2099_v5 = vmov 0.0  }
  0x2a   : > { %315 = vst.msk [vmem:[#allocation2] sm:$0xff] %vm314_vm0, %v2098_v4  ;;  %316 = vst.msk [vmem:[#allocation2 + $0x8] sm:$0xff] %vm314_vm0, %v2098_v4 }
  0x2b   : > { %317 = vst.msk [vmem:[#allocation2 + $0x10] sm:$0xff] %vm314_vm0, %v2098_v4  ;;  %318 = vst.msk [vmem:[#allocation2 + $0x18] sm:$0xff] %vm314_vm0, %v2098_v4 }
  0x2c   : > { %319 = vst.msk [vmem:[#allocation2 + $0x20] sm:$0xff] %vm314_vm0, %v2098_v4  ;;  %320 = vst.msk [vmem:[#allocation2 + $0x28] sm:$0xff] %vm314_vm0, %v2098_v4 }
  0x2d   : > { %321 = vst.msk [vmem:[#allocation2 + $0x30] sm:$0xff] %vm314_vm0, %v2098_v4  ;;  %322 = vst.msk [vmem:[#allocation2 + $0x38] sm:$0xff] %vm314_vm0, %v2098_v4 }
  0x2e   : > { %323 = vst.msk [vmem:[#allocation2 + $0x40] sm:$0xff] %vm314_vm0, %v2098_v4  ;;  %324 = vst.msk [vmem:[#allocation2 + $0x48] sm:$0xff] %vm314_vm0, %v2098_v4 }
  0x2f   : > { %325 = vst.msk [vmem:[#allocation2 + $0x50] sm:$0xff] %vm314_vm0, %v2098_v4  ;;  %326 = vst.msk [vmem:[#allocation2 + $0x58] sm:$0xff] %vm314_vm0, %v2098_v4 }
  0x30   : > { %327 = vst.msk [vmem:[#allocation2 + $0x60] sm:$0xff] %vm314_vm0, %v2098_v4  ;;  %328 = vst.msk [vmem:[#allocation2 + $0x68] sm:$0xff] %vm314_vm0, %v2098_v4 }
  0x31   : > { %329 = vst.msk [vmem:[#allocation2 + $0x70] sm:$0xff] %vm314_vm0, %v2098_v4  ;;  %330 = vst.msk [vmem:[#allocation2 + $0x78] sm:$0xff] %vm314_vm0, %v2098_v4 }
  0x32   : > { %331 = vst.msk [vmem:[#allocation3] sm:$0xff] %vm314_vm0, %v2099_v5  ;;  %332 = vst.msk [vmem:[#allocation3 + $0x8] sm:$0xff] %vm314_vm0, %v2099_v5 }
  0x33   : > { %333 = vst.msk [vmem:[#allocation3 + $0x10] sm:$0xff] %vm314_vm0, %v2099_v5  ;;  %334 = vst.msk [vmem:[#allocation3 + $0x18] sm:$0xff] %vm314_vm0, %v2099_v5 }
  0x34   : > { %335 = vst.msk [vmem:[#allocation3 + $0x20] sm:$0xff] %vm314_vm0, %v2099_v5  ;;  %336 = vst.msk [vmem:[#allocation3 + $0x28] sm:$0xff] %vm314_vm0, %v2099_v5 }
  0x35   : > { %337 = vst.msk [vmem:[#allocation3 + $0x30] sm:$0xff] %vm314_vm0, %v2099_v5  ;;  %338 = vst.msk [vmem:[#allocation3 + $0x38] sm:$0xff] %vm314_vm0, %v2099_v5 }
  0x36   : > { %339 = vst.msk [vmem:[#allocation3 + $0x40] sm:$0xff] %vm314_vm0, %v2099_v5  ;;  %340 = vst.msk [vmem:[#allocation3 + $0x48] sm:$0xff] %vm314_vm0, %v2099_v5 }
  0x37   : > { %341 = vst.msk [vmem:[#allocation3 + $0x50] sm:$0xff] %vm314_vm0, %v2099_v5  ;;  %342 = vst.msk [vmem:[#allocation3 + $0x58] sm:$0xff] %vm314_vm0, %v2099_v5 }
  0x38   : > { %343 = vst.msk [vmem:[#allocation3 + $0x60] sm:$0xff] %vm314_vm0, %v2099_v5  ;;  %344 = vst.msk [vmem:[#allocation3 + $0x68] sm:$0xff] %vm314_vm0, %v2099_v5 }
  0x39   : > { %345 = vst.msk [vmem:[#allocation3 + $0x70] sm:$0xff] %vm314_vm0, %v2099_v5  ;;  %346 = vst.msk [vmem:[#allocation3 + $0x78] sm:$0xff] %vm314_vm0, %v2099_v5 }
  0x3a   : > { %348 = vst.msk [vmem:[#allocation4] sm:$0xff] %vm347_vm1, %v2099_v5  ;;  %349 = vst.msk [vmem:[#allocation4 + $0x8] sm:$0xff] %vm347_vm1, %v2099_v5 }
  0x3b   : > { %350 = vst.msk [vmem:[#allocation4 + $0x10] sm:$0xff] %vm347_vm1, %v2099_v5  ;;  %351 = vst.msk [vmem:[#allocation4 + $0x18] sm:$0xff] %vm347_vm1, %v2099_v5 }
  0x3c   : > { %352 = vst.msk [vmem:[#allocation4 + $0x20] sm:$0xff] %vm347_vm1, %v2099_v5  ;;  %353 = vst.msk [vmem:[#allocation4 + $0x28] sm:$0xff] %vm347_vm1, %v2099_v5 }
  0x3d   : > { %354 = vst.msk [vmem:[#allocation4 + $0x30] sm:$0xff] %vm347_vm1, %v2099_v5  ;;  %355 = vst.msk [vmem:[#allocation4 + $0x38] sm:$0xff] %vm347_vm1, %v2099_v5 }
  0x3e   : > { %356 = vst.msk [vmem:[#allocation4 + $0x40] sm:$0xff] %vm347_vm1, %v2099_v5  ;;  %357 = vst.msk [vmem:[#allocation4 + $0x48] sm:$0xff] %vm347_vm1, %v2099_v5 }
  0x3f   : > { %358 = vst.msk [vmem:[#allocation4 + $0x50] sm:$0xff] %vm347_vm1, %v2099_v5  ;;  %359 = vst.msk [vmem:[#allocation4 + $0x58] sm:$0xff] %vm347_vm1, %v2099_v5 }
  0x40   : > { %360 = vst.msk [vmem:[#allocation4 + $0x60] sm:$0xff] %vm347_vm1, %v2099_v5  ;;  %361 = vst.msk [vmem:[#allocation4 + $0x68] sm:$0xff] %vm347_vm1, %v2099_v5 }
  0x41   : > { %362 = vst.msk [vmem:[#allocation4 + $0x70] sm:$0xff] %vm347_vm1, %v2099_v5  ;;  %363 = vst.msk [vmem:[#allocation4 + $0x78] sm:$0xff] %vm347_vm1, %v2099_v5 }
  0x42 PF: > { %v395_v6 = vld [vmem:[%s2207_s8 + $0x78] sm:$0xff]  ;;  %vm421_vm2 = vcmask 261120   ;;  %v401_v7 = vlaneseq  ;;  %v2100_v8 = vmov 0.0   ;;  %vm2101_vm3 = vmmov 0   ;;  %v394_v10 = vld [vmem:[%s2207_s8 + $0x70] sm:$0xff]  ;;  %v393_v12 = vld [vmem:[%s2207_s8 + $0x68] sm:$0xff] }
  0x43   : > { %1789 = vmatprep.subr.mxu0 %v2100_v8  ;;  %1821 = vmatprep.mubr.msk.f32.mxu0 %vm2101_vm3, %v2100_v8  ;;  %v2273_v13 = vld [vmem:[%s2946_s3] sm:$0x3]  ;;  %v366_v14 = vld [vmem:[%s2197_s29 + $0x10] sm:$0xff]  ;;  %v367_v17 = vld [vmem:[%s2197_s29 + $0x18] sm:$0xff]  ;;  %p1736_p13 = scmp.ne.s32.totalorder %s2080_s17, 1 }
  0x44   : > { %1790 = vmatpush3.xpose.msk.msra.mxu0 %vm421_vm2, %v395_v6  ;;  %v2264_v9 = vshrl.u32 %v401_v7, 7  ;;  %1824 = vmatprep.subr.mxu1 %v395_v6  ;;  %v364_v16 = vld [vmem:[%s2197_s29] sm:$0xff]  ;;  %v365_v18 = vld [vmem:[%s2197_s29 + $0x8] sm:$0xff]  ;;  %v391_v23 = vld [vmem:[%s2207_s8 + $0x58] sm:$0xff] }
  0x45   : > { %1791 = vmatprep.subr.mxu0 %v2100_v8  ;;  %1825 = vmatpush3.msra.mxu1 %v395_v6  ;;  %v392_v19 = vld [vmem:[%s2207_s8 + $0x60] sm:$0xff]  ;;  %v369_v25 = vld [vmem:[%s2197_s29 + $0x28] sm:$0xff]  ;;  %v390_v31 = vld [vmem:[%s2207_s8 + $0x50] sm:$0xff] }
  0x46   : > { %v403_v11 = vsub.s32 0, %v2264_v9  ;;  %1826 = vmatprep.subr.mxu1 %v394_v10  ;;  %v368_v28 = vld [vmem:[%s2197_s29 + $0x20] sm:$0xff]  ;;  %v371_v34 = vld [vmem:[%s2197_s29 + $0x38] sm:$0xff]  ;;  %v370_v35 = vld [vmem:[%s2197_s29 + $0x30] sm:$0xff] }
  0x47   : > { %1827 = vmatpush3.msra.mxu1 %v394_v10  ;;  %v389_v36 = vld [vmem:[%s2207_s8 + $0x48] sm:$0xff]  ;;  %v372_v42 = vld [vmem:[%s2197_s29 + $0x40] sm:$0xff]  ;;  %v387_v46 = vld [vmem:[%s2207_s8 + $0x38] sm:$0xff] }
  0x48   : > { %1792 = vmatpush3.xpose.msk.msra.mxu0 %vm421_vm2, %v394_v10  ;;  %v2280_v15 = vrot.slane %v2273_v13, %v403_v11  ;;  %1828 = vmatprep.subr.mxu1 %v393_v12  ;;  %v373_v41 = vld [vmem:[%s2197_s29 + $0x48] sm:$0xff]  ;;  %v388_v43 = vld [vmem:[%s2207_s8 + $0x40] sm:$0xff]  ;;  %v375_v49 = vld [vmem:[%s2197_s29 + $0x58] sm:$0xff] }
  0x49   : > { %1793 = vmatprep.subr.mxu0 %v2100_v8  ;;  %1829 = vmatpush3.msra.mxu1 %v393_v12  ;;  %v374_v50 = vld [vmem:[%s2197_s29 + $0x50] sm:$0xff]  ;;  %v377_v56 = vld [vmem:[%s2197_s29 + $0x68] sm:$0xff]  ;;  %v376_v57 = vld [vmem:[%s2197_s29 + $0x60] sm:$0xff] }
  0x4a   : > { %v407_v20 = vmul.f32 %v2280_v15, %v366_v14  ;;  %v405_v21 = vmul.f32 %v2280_v15, %v364_v16  ;;  %v408_v22 = vmul.f32 %v2280_v15, %v367_v17  ;;  %1830 = vmatprep.subr.mxu1 %v392_v19  ;;  %v406_v24 = vmul.f32 %v2280_v15, %v365_v18  ;;  %v386_v51 = vld [vmem:[%s2207_s8 + $0x30] sm:$0xff]  ;;  %v385_v58 = vld [vmem:[%s2207_s8 + $0x28] sm:$0xff]  ;;  %v384_v61 = vld [vmem:[%s2207_s8 + $0x20] sm:$0xff] }
  0x4b   : > { %1831 = vmatpush3.msra.mxu1 %v392_v19  ;;  %v410_v30 = vmul.f32 %v2280_v15, %v369_v25  ;;  %v409_v33 = vmul.f32 %v2280_v15, %v368_v28  ;;  %v412_v38 = vmul.f32 %v2280_v15, %v371_v34  ;;  %v411_v40 = vmul.f32 %v2280_v15, %v370_v35  ;;  %v379_v0 = vld [vmem:[%s2197_s29 + $0x78] sm:$0xff]  ;;  %v378_v1 = vld [vmem:[%s2197_s29 + $0x70] sm:$0xff]  ;;  %v396_v18 = vld [vmem:[%s2209_s9] sm:$0xff] }
  0x4c   : > { %1794 = vmatpush3.xpose.msk.msra.mxu0 %vm421_vm2, %v393_v12  ;;  %v428_v26 = vsel %vm421_vm2, %v407_v20, 0.0  ;;  %v422_v27 = vsel %vm421_vm2, %v405_v21, 0.0  ;;  %1832 = vmatprep.subr.mxu1 %v391_v23  ;;  %v431_v29 = vsel %vm421_vm2, %v408_v22, 0.0  ;;  %v425_v32 = vsel %vm421_vm2, %v406_v24, 0.0  ;;  %v383_v2 = vld [vmem:[%s2207_s8 + $0x18] sm:$0xff]  ;;  %v382_v7 = vld [vmem:[%s2207_s8 + $0x10] sm:$0xff] }
  0x4d   : > { %1795 = vmatprep.subr.mxu0 %v2100_v8  ;;  %429 = vadd.xlane.f32.xlu1 %v428_v26  ;;  %v437_v37 = vsel %vm421_vm2, %v410_v30, 0.0  ;;  %v434_v39 = vsel %vm421_vm2, %v409_v33, 0.0  ;;  %v443_v44 = vsel %vm421_vm2, %v412_v38, 0.0  ;;  %v414_v45 = vmul.f32 %v2280_v15, %v373_v41  ;;  %v381_v12 = vld [vmem:[%s2207_s8 + $0x8] sm:$0xff] }
  0x4e   : > { %423 = vadd.xlane.f32.xlu0 %v422_v27  ;;  %1833 = vmatpush3.msra.mxu1 %v391_v23  ;;  %v440_v47 = vsel %vm421_vm2, %v411_v40, 0.0  ;;  %v413_v48 = vmul.f32 %v2280_v15, %v372_v42  ;;  %v416_v53 = vmul.f32 %v2280_v15, %v375_v49  ;;  %v415_v55 = vmul.f32 %v2280_v15, %v374_v50 }
  0x4f   : > { %1834 = vmatprep.subr.mxu1 %v390_v31  ;;  %v449_v52 = vsel %vm421_vm2, %v414_v45, 0.0  ;;  %v418_v60 = vmul.f32 %v2280_v15, %v377_v56  ;;  %v417_v63 = vmul.f32 %v2280_v15, %v376_v57  ;;  %v420_v4 = vmul.f32 %v2280_v15, %v379_v0 }
  0x50   : > { %1796 = vmatpush3.xpose.msk.msra.mxu0 %vm421_vm2, %v392_v19  ;;  %1835 = vmatpush3.msra.mxu1 %v390_v31  ;;  %v446_v54 = vsel %vm421_vm2, %v413_v48, 0.0  ;;  %v455_v59 = vsel %vm421_vm2, %v416_v53, 0.0  ;;  %v452_v62 = vsel %vm421_vm2, %v415_v55, 0.0  ;;  %v419_v6 = vmul.f32 %v2280_v15, %v378_v1  ;;  %v380_v15 = vld [vmem:[%s2207_s8] sm:$0xff]  ;;  %v397_v19 = vld [vmem:[%s2209_s9 + $0x8] sm:$0xff]  ;;  %v399_v48 = vld [vmem:[%s2209_s9 + $0x18] sm:$0xff] }
  0x51   : > { %1797 = vmatprep.subr.mxu0 %v2100_v8  ;;  %432 = vadd.xlane.f32.xlu1 %v431_v29  ;;  %v461_v3 = vsel %vm421_vm2, %v418_v60, 0.0  ;;  %v458_v5 = vsel %vm421_vm2, %v417_v63, 0.0  ;;  %v467_v10 = vsel %vm421_vm2, %v420_v4, 0.0  ;;  %v471_v16 = vrot.slane %v2273_v13, 1 }
  0x52   : > { %426 = vadd.xlane.f32.xlu0 %v425_v32  ;;  %1836 = vmatprep.subr.mxu1 %v389_v36  ;;  %v464_v14 = vsel %vm421_vm2, %v419_v6, 0.0  ;;  %v2102_v17 = vmov 0   ;;  %vm660_vm4 = vnez %v396_v18  ;;  %vm661_vm5 = vnez %v397_v19 }
  0x53   : > { %1837 = vmatpush3.msra.mxu1 %v389_v36  ;;  %1943 = vset.pattern.permute.xlu1 %v2102_v17  ;;  %v664_v20 = vsel %vm660_vm4, 16843009, %v2102_v17  ;;  %v665_v24 = vsel %vm661_vm5, 16843009, %v2102_v17  ;;  %vm663_vm11 = vnez %v399_v48 }
  0x54   : > { %1798 = vmatpush3.xpose.msk.msra.mxu0 %vm421_vm2, %v391_v23  ;;  %1838 = vmatprep.subr.mxu1 %v388_v43  ;;  %v668_v21 = vunpack.c.0.s8 %v664_v20  ;;  %v669_v22 = vunpack.c.1.s8 %v664_v20  ;;  %v670_v23 = vunpack.c.2.s8 %v664_v20  ;;  %v671_v13 = vunpack.c.3.s8 %v664_v20 }
  0x55   : > { %1799 = vmatprep.subr.mxu0 %v2100_v8  ;;  %438 = vadd.xlane.f32.xlu1 %v437_v37  ;;  %v673_v29 = vunpack.c.1.s8 %v665_v24  ;;  %v672_v30 = vunpack.c.0.s8 %v665_v24  ;;  %v675_v33 = vunpack.c.3.s8 %v665_v24  ;;  %v674_v35 = vunpack.c.2.s8 %v665_v24 }
  0x56   : > { %435 = vadd.xlane.f32.xlu0 %v434_v39  ;;  %1839 = vmatpush3.msra.mxu1 %v388_v43  ;;  %v684_v27 = vpack.c.b16 %v668_v21, %v668_v21  ;;  %v686_v28 = vpack.c.b16 %v669_v22, %v669_v22  ;;  %v690_v32 = vpack.c.b16 %v671_v13, %v671_v13  ;;  %v2396_v1 = vsel %vm663_vm11, 16843009, %v2102_v17 }
  0x57   : > { %1840 = vmatprep.subr.mxu1 %v387_v46  ;;  %1942 = vset.pattern.permute.xlu0 %v2102_v17  ;;  %v694_v40 = vpack.c.b16 %v673_v29, %v673_v29  ;;  %v692_v41 = vpack.c.b16 %v672_v30, %v672_v30  ;;  %v698_v45 = vpack.c.b16 %v675_v33, %v675_v33  ;;  %v680_v18 = vunpack.c.0.s8 %v2396_v1 }
  0x58   : > { %1800 = vmatpush3.xpose.msk.msra.mxu0 %vm421_vm2, %v390_v31  ;;  %1841 = vmatpush3.msra.mxu1 %v387_v46  ;;  %v688_v31 = vpack.c.b16 %v670_v23, %v670_v23  ;;  %v685_v38 = vpack.c.b8 %v684_v27, %v684_v27  ;;  %v687_v39 = vpack.c.b8 %v686_v28, %v686_v28 }
  0x59   : > { %1801 = vmatprep.subr.mxu0 %v2100_v8  ;;  %444 = vadd.xlane.f32.xlu1 %v443_v44  ;;  %v695_v49 = vpack.c.b8 %v694_v40, %v694_v40  ;;  %v693_v50 = vpack.c.b8 %v692_v41, %v692_v41  ;;  %v699_v55 = vpack.c.b8 %v698_v45, %v698_v45  ;;  %v2642_v40 = vld [vmem:[#allocation2 + $0x20] sm:$0xff] }
  0x5a   : > { %441 = vadd.xlane.f32.xlu0 %v440_v47  ;;  %1842 = vmatprep.subr.mxu1 %v386_v51  ;;  %v689_v42 = vpack.c.b8 %v688_v31, %v688_v31  ;;  %vm716_vm7 = vnez %v685_v38  ;;  %vm717_vm8 = vnez %v687_v39 }
  0x5b   : > { %1843 = vmatpush3.msra.mxu1 %v386_v51  ;;  %v732_v57 = vsel %vm716_vm7, 16843009, %v2102_v17  ;;  %vm721_vm12 = vnez %v695_v49  ;;  %vm720_vm13 = vnez %v693_v50  ;;  %vm723_vm14 = vnez %v699_v55 }
  0x5c   : > { %1802 = vmatpush3.xpose.msk.msra.mxu0 %vm421_vm2, %v389_v36  ;;  %1844 = vmatprep.subr.mxu1 %v385_v58  ;;  %vm718_vm9 = vnez %v689_v42  ;;  %v739_v19 = vsel %vm723_vm14, 16843009, %v2102_v17 }
  0x5d   : > { %1803 = vmatprep.subr.mxu0 %v2100_v8  ;;  %450 = vadd.xlane.f32.xlu1 %v449_v52  ;;  %v755_v33 = vunpack.c.0.s8 %v739_v19 }
  0x5e   : > { %447 = vadd.xlane.f32.xlu0 %v446_v54  ;;  %1845 = vmatpush3.msra.mxu1 %v385_v58 }
  0x5f   : > { %1846 = vmatprep.subr.mxu1 %v384_v61 }
  0x60   : > { %1804 = vmatpush3.xpose.msk.msra.mxu0 %vm421_vm2, %v388_v43  ;;  %1847 = vmatpush3.msra.mxu1 %v384_v61  ;;  %v691_v43 = vpack.c.b8 %v690_v32, %v690_v32 }
  0x61   : > { %1805 = vmatprep.subr.mxu0 %v2100_v8  ;;  %456 = vadd.xlane.f32.xlu1 %v455_v59 }
  0x62   : > { %453 = vadd.xlane.f32.xlu0 %v452_v62  ;;  %1848 = vmatprep.subr.mxu1 %v383_v2  ;;  %vm719_vm10 = vnez %v691_v43 }
  0x63   : > { %1849 = vmatpush3.msra.mxu1 %v383_v2  ;;  %v735_v62 = vsel %vm719_vm10, 16843009, %v2102_v17 }
  0x64   : > { %1806 = vmatpush3.xpose.msk.msra.mxu0 %vm421_vm2, %v387_v46  ;;  %1850 = vmatprep.subr.mxu1 %v382_v7  ;;  %v696_v46 = vpack.c.b16 %v674_v35, %v674_v35  ;;  %v751_v6 = vunpack.c.0.s8 %v735_v62 }
  0x65   : > { %1807 = vmatprep.subr.mxu0 %v2100_v8  ;;  %462 = vadd.xlane.f32.xlu1 %v461_v3 }
  0x66   : > { %459 = vadd.xlane.f32.xlu0 %v458_v5  ;;  %1851 = vmatpush3.msra.mxu1 %v382_v7  ;;  %v697_v59 = vpack.c.b8 %v696_v46, %v696_v46 }
  0x67   : > { %1852 = vmatprep.subr.mxu1 %v381_v12 }
  0x68   : > { %1808 = vmatpush3.xpose.msk.msra.mxu0 %vm421_vm2, %v386_v51  ;;  %1853 = vmatpush3.msra.mxu1 %v381_v12  ;;  %vm722_vm15 = vnez %v697_v59 }
  0x69   : > { %1809 = vmatprep.subr.mxu0 %v2100_v8  ;;  %468 = vadd.xlane.f32.xlu1 %v467_v10  ;;  %v738_v23 = vsel %vm722_vm15, 16843009, %v2102_v17 }
  0x6a   : > { %465 = vadd.xlane.f32.xlu0 %v464_v14  ;;  %1854 = vmatprep.subr.mxu1 %v380_v15  ;;  %v737_v14 = vsel %vm721_vm12, 16843009, %v2102_v17  ;;  %v754_v39 = vunpack.c.0.s8 %v738_v23  ;;  %v2628_v23 = vld [vmem:[#allocation2 + $0x8] sm:$0xff] }
  0x6b   : > { %1855 = vmatpush3.msra.mxu1 %v380_v15  ;;  %v753_v27 = vunpack.c.0.s8 %v737_v14 }
  0x6c   : > { %1810 = vmatpush3.xpose.msk.msra.mxu0 %vm421_vm2, %v385_v58  ;;  %v733_v58 = vsel %vm717_vm8, 16843009, %v2102_v17 }
  0x6d   : > { %1811 = vmatprep.subr.mxu0 %v2100_v8  ;;  %v749_v3 = vunpack.c.0.s8 %v733_v58  ;;  %vm2461_vm11 = vcmp.ne.s32.totalorder %v753_v27, 0 }
  0x6f   : > { %vm2411_vm3 = vcmp.ne.s32.totalorder %v749_v3, 0 }
  0x70   : > { %1812 = vmatpush3.xpose.msk.msra.mxu0 %vm421_vm2, %v384_v61  ;;  %v734_v61 = vsel %vm718_vm9, 16843009, %v2102_v17 }
  0x71   : > { %1813 = vmatprep.subr.mxu0 %v2100_v8  ;;  %v750_v5 = vunpack.c.0.s8 %v734_v61 }
  0x73   : > { %vm2424_vm5 = vcmp.ne.s32.totalorder %v750_v5, 0 }
  0x74   : > { %1814 = vmatpush3.xpose.msk.msra.mxu0 %vm421_vm2, %v383_v2  ;;  %v748_v2 = vunpack.c.0.s8 %v732_v57  ;;  %v682_v57 = vunpack.c.2.s8 %v2396_v1 }
  0x75   : > { %1815 = vmatprep.subr.mxu0 %v2100_v8 }
  0x76   : > { %vm2407_vm1 = vcmp.ne.s32.totalorder %v748_v2, 0 }
  0x78   : > { %1816 = vmatpush3.xpose.msk.msra.mxu0 %vm421_vm2, %v382_v7 }
  0x79   : > { %1817 = vmatprep.subr.mxu0 %v2100_v8 }
  0x7c   : > { %1818 = vmatpush3.xpose.msk.msra.mxu0 %vm421_vm2, %v381_v12 }
  0x7d   : > { %1819 = vmatprep.subr.mxu0 %v2100_v8  ;;  %v398_v8 = vld [vmem:[%s2209_s9 + $0x10] sm:$0xff] }
  0x7e   : > { %vm662_vm6 = vnez %v398_v8 }
  0x7f   : > { %v666_v34 = vsel %vm662_vm6, 16843009, %v2102_v17  ;;  %vm2428_vm6 = vcmp.ne.s32.totalorder %v751_v6, 0 }
  0x80   : > { %1820 = vmatpush3.xpose.msk.msra.mxu0 %vm421_vm2, %v380_v15  ;;  %v677_v44 = vunpack.c.1.s8 %v666_v34  ;;  %v676_v47 = vunpack.c.0.s8 %v666_v34  ;;  %v679_v52 = vunpack.c.3.s8 %v666_v34  ;;  %v678_v56 = vunpack.c.2.s8 %v666_v34 }
  0x81   : > { %v736_v15 = vsel %vm720_vm13, 16843009, %v2102_v17  ;;  %v2437_v34 = vpack.c.b16 %v680_v18, %v680_v18 }
  0x82   : > { %v702_v51 = vpack.c.b16 %v677_v44, %v677_v44  ;;  %v700_v60 = vpack.c.b16 %v676_v47, %v676_v47  ;;  %v706_v0 = vpack.c.b16 %v679_v52, %v679_v52  ;;  %v704_v4 = vpack.c.b16 %v678_v56, %v678_v56 }
  0x83   : > { %1822 = vmatmul.mubr.msk.f32.vlgmr.msra.gmra.mxu0 %vm421_vm2, %v471_v16  ;;  %v681_v16 = vunpack.c.1.s8 %v2396_v1  ;;  %v752_v28 = vunpack.c.0.s8 %v736_v15  ;;  %v683_v56 = vunpack.c.3.s8 %v2396_v1  ;;  %v709_v14 = vpack.c.b8 %v2437_v34, %v2437_v34 }
  0x84   : > { %v703_v63 = vpack.c.b8 %v702_v51, %v702_v51  ;;  %v701_v7 = vpack.c.b8 %v700_v60, %v700_v60  ;;  %v707_v20 = vpack.c.b8 %v706_v0, %v706_v0  ;;  %v705_v13 = vpack.c.b8 %v704_v4, %v704_v4 }
  0x85   : > { %vm2468_vm12 = vcmp.ne.s32.totalorder %v752_v28, 0  ;;  %v714_v15 = vpack.c.b16 %v683_v56, %v683_v56 }
  0x86   : > { %vm725_vm0 = vnez %v703_v63  ;;  %vm2420_vm4 = vnez %v701_v7  ;;  %vm2443_vm7 = vnez %v707_v20  ;;  %vm2456_vm8 = vnez %v705_v13  ;;  %v796_v13 = vld [vmem:[#allocation2] sm:$0xff] }
  0x87   : > { %v2433_v9 = vsel %vm725_vm0, 16843009, %v2102_v17  ;;  %v2475_v50 = vsel %vm2443_vm7, 16843009, %v2102_v17  ;;  %vm2491_vm0 = vcmp.ne.s32.totalorder %v755_v33, 0  ;;  %v715_v31 = vpack.c.b8 %v714_v15, %v714_v15 }
  0x88   : > { %v742_v7 = vsel %vm2456_vm8, 16843009, %v2102_v17  ;;  %vm2534_vm8 = vnez %v709_v14 }
  0xd6   : > { %v2379_v25 = vpop.xlane.xlu1 %429 }
  0xd7   : > { %v2381_v26 = vpop.xlane.xlu0 %423 }
  0xda   : > { %v2384_v36 = vpop.xlane.xlu1 %432 }
  0xdb   : > { %v2386_v37 = vpop.xlane.xlu0 %426 }
  0xde   : > { %v439_v53 = vpop.xlane.xlu1 %438 }
  0xdf   : > { %v2389_v54 = vpop.xlane.xlu0 %435 }
  0xe2   : > { %v2398_v10 = vpop.xlane.xlu1 %444 }
  0xe3   : > { %v2400_v12 = vpop.xlane.xlu0 %441 }
  0xe6   : > { %v451_v41 = vpop.xlane.xlu1 %450 }
  0xe7   : > { %v448_v42 = vpop.xlane.xlu0 %447 }
  0xea   : > { %v457_v61 = vpop.xlane.xlu1 %456 }
  0xeb   : > { %v454_v62 = vpop.xlane.xlu0 %453 }
  0xee   : > { %v463_v27 = vpop.xlane.xlu1 %462 }
  0xef   : > { %v460_v28 = vpop.xlane.xlu0 %459 }
 0x143   : > { %v588_v21 = vpop.f32.mrf.mxu0 }
 0x144   : > { %v2418_v24 = vrot.slane %v588_v21, %v403_v11  ;;  %v2435_v11 = vpack.c.b16 %v681_v16, %v681_v16  ;;  %v712_v16 = vpack.c.b16 %v682_v57, %v682_v57 }
 0x145   : > { %v1823_v30 = vpop.f32.mrf.mxu0 }
 0x146   : > { %v596_v35 = vadd.f32 %v2418_v24, %v2381_v26  ;;  %v597_v38 = vadd.f32 %v2418_v24, %v2386_v37  ;;  %v598_v43 = vadd.f32 %v2418_v24, %v2379_v25  ;;  %v599_v44 = vadd.f32 %v2418_v24, %v2384_v36  ;;  %v2651_v37 = vld [vmem:[#allocation2 + $0x30] sm:$0xff] }
 0x147   : > { %v2454_v26 = vsel %vm2420_vm4, 16843009, %v2102_v17  ;;  %v601_v45 = vadd.f32 %v2418_v24, %v439_v53  ;;  %v757_v25 = vunpack.c.0.s8 %v2433_v9  ;;  %v600_v48 = vadd.f32 %v2418_v24, %v2389_v54 }
 0x148   : > { %vm612_vm9 = vcmp.gt.f32.partialorder %v596_v35, 0.0  ;;  %vm613_vm10 = vcmp.gt.f32.partialorder %v597_v38, 0.0  ;;  %v628_v36 = vmul.f32 0.2, %v596_v35  ;;  %v629_v47 = vmul.f32 0.2, %v597_v38 }
 0x149   : > { %vm614_vm13 = vcmp.gt.f32.partialorder %v598_v43, 0.0  ;;  %v630_v51 = vmul.f32 0.2, %v598_v43  ;;  %vm615_vm14 = vcmp.gt.f32.partialorder %v599_v44, 0.0  ;;  %v631_v52 = vmul.f32 0.2, %v599_v44 }
 0x14a   : > { %v644_v53 = vsel %vm612_vm9, %v596_v35, %v628_v36  ;;  %v645_v55 = vsel %vm613_vm10, %v597_v38, %v629_v47  ;;  %v633_v59 = vmul.f32 0.2, %v601_v45  ;;  %v756_v60 = vunpack.c.0.s8 %v2454_v26  ;;  %v469_v47 = vpop.xlane.xlu1 %468  ;;  %v803_v26 = vld [vmem:[#allocation2 + $0x38] sm:$0xff] }
 0x14b   : > { %v2481_v54 = vsel %vm2407_vm1, %v644_v53, -9e+15  ;;  %v2485_v58 = vsel %vm2411_vm3, %v645_v55, -9e+15  ;;  %v646_v63 = vsel %vm614_vm13, %v598_v43, %v630_v51  ;;  %v647_v0 = vsel %vm615_vm14, %v599_v44, %v631_v52 }
 0x14c   : > { %812 = vmax.xlane.f32.xlu0 %v2481_v54  ;;  %814 = vmax.xlane.f32.xlu1 %v2485_v58  ;;  %vm617_vm15 = vcmp.gt.f32.partialorder %v601_v45, 0.0  ;;  %v632_v1 = vmul.f32 0.2, %v600_v48  ;;  %vm2495_vm1 = vcmp.ne.s32.totalorder %v754_v39, 0  ;;  %vm616_vm3 = vcmp.gt.f32.partialorder %v600_v48, 0.0 }
 0x14d   : > { %v603_v4 = vadd.f32 %v2418_v24, %v2398_v10  ;;  %v602_v5 = vadd.f32 %v2418_v24, %v2400_v12  ;;  %v711_v6 = vpack.c.b8 %v2435_v11, %v2435_v11  ;;  %v2512_v18 = vsel %vm2424_vm5, %v646_v63, -9e+15 }
 0x14e   : > { %v2516_v10 = vsel %vm2428_vm6, %v647_v0, -9e+15  ;;  %v649_v12 = vsel %vm617_vm15, %v601_v45, %v633_v59  ;;  %v605_v19 = vadd.f32 %v2418_v24, %v451_v41  ;;  %v648_v20 = vsel %vm616_vm3, %v600_v48, %v632_v1  ;;  %v466_v48 = vpop.xlane.xlu0 %465 }
 0x14f   : > { %v635_v21 = vmul.f32 0.2, %v603_v4  ;;  %v634_v22 = vmul.f32 0.2, %v602_v5  ;;  %v604_v8 = vadd.f32 %v2418_v24, %v448_v42  ;;  %vm619_vm4 = vcmp.gt.f32.partialorder %v603_v4, 0.0 }
 0x150   : > { %816 = vmax.xlane.f32.xlu0 %v2512_v18  ;;  %818 = vmax.xlane.f32.xlu1 %v2516_v10  ;;  %vm618_vm7 = vcmp.gt.f32.partialorder %v602_v5, 0.0  ;;  %vm2522_vm5 = vcmp.ne.s32.totalorder %v757_v25, 0  ;;  %vm2526_vm6 = vnez %v711_v6  ;;  %v2532_v29 = vsel %vm2461_vm11, %v649_v12, -9e+15 }
 0x151   : > { %v713_v32 = vpack.c.b8 %v712_v16, %v712_v16  ;;  %v2540_v33 = vsel %vm2468_vm12, %v648_v20, -9e+15  ;;  %v637_v9 = vmul.f32 0.2, %v605_v19  ;;  %v607_v11 = vadd.f32 %v2418_v24, %v457_v61 }
 0x152   : > { %v606_v34 = vadd.f32 %v2418_v24, %v454_v62  ;;  %v651_v35 = vsel %vm619_vm4, %v603_v4, %v635_v21  ;;  %v650_v38 = vsel %vm618_vm7, %v602_v5, %v634_v22  ;;  %vm621_vm9 = vcmp.gt.f32.partialorder %v605_v19, 0.0 }
 0x153   : > { %v636_v39 = vmul.f32 0.2, %v604_v8  ;;  %vm620_vm10 = vcmp.gt.f32.partialorder %v604_v8, 0.0  ;;  %vm2548_vm11 = vcmp.ne.s32.totalorder %v756_v60, 0  ;;  %v759_v41 = vunpack.c.0.s8 %v2475_v50 }
 0x154   : > { %822 = vmax.xlane.f32.xlu1 %v2532_v29  ;;  %820 = vmax.xlane.f32.xlu0 %v2540_v33  ;;  %v758_v42 = vunpack.c.0.s8 %v742_v7  ;;  %v745_v43 = vsel %vm2526_vm6, 16843009, %v2102_v17  ;;  %v744_v44 = vsel %vm2534_vm8, 16843009, %v2102_v17  ;;  %vm2559_vm12 = vnez %v715_v31 }
 0x155   : > { %vm2563_vm13 = vnez %v713_v32  ;;  %v2569_v45 = vsel %vm2491_vm0, %v651_v35, -9e+15  ;;  %v2573_v46 = vsel %vm2495_vm1, %v650_v38, -9e+15  ;;  %v653_v25 = vsel %vm621_vm9, %v605_v19, %v637_v9  ;;  %v799_v32 = vld [vmem:[#allocation2 + $0x18] sm:$0xff]  ;;  %v2633_v9 = vld [vmem:[#allocation2 + $0x10] sm:$0xff] }
 0x156   : > { %v639_v36 = vmul.f32 0.2, %v607_v11  ;;  %v652_v49 = vsel %vm620_vm10, %v604_v8, %v636_v39  ;;  %v638_v50 = vmul.f32 0.2, %v606_v34  ;;  %v609_v51 = vadd.f32 %v2418_v24, %v463_v27  ;;  %v801_v39 = vld [vmem:[#allocation2 + $0x28] sm:$0xff] }
 0x157   : > { %v608_v52 = vadd.f32 %v2418_v24, %v460_v28  ;;  %vm623_vm14 = vcmp.gt.f32.partialorder %v607_v11, 0.0  ;;  %vm2580_vm15 = vcmp.ne.s32.totalorder %v759_v41, 0  ;;  %vm622_vm0 = vcmp.gt.f32.partialorder %v606_v34, 0.0 }
 0x158   : > { %826 = vmax.xlane.f32.xlu1 %v2569_v45  ;;  %824 = vmax.xlane.f32.xlu0 %v2573_v46  ;;  %vm2584_vm1 = vcmp.ne.s32.totalorder %v758_v42, 0  ;;  %v761_v56 = vunpack.c.0.s8 %v745_v43  ;;  %v760_v57 = vunpack.c.0.s8 %v744_v44  ;;  %v747_v59 = vsel %vm2559_vm12, 16843009, %v2102_v17 }
 0x159   : > { %v746_v60 = vsel %vm2563_vm13, 16843009, %v2102_v17  ;;  %v611_v61 = vadd.f32 %v2418_v24, %v469_v47  ;;  %v610_v62 = vadd.f32 %v2418_v24, %v466_v48  ;;  %v2598_v63 = vsel %vm2522_vm5, %v653_v25, -9e+15 }
 0x15a   : > { %v2602_v0 = vsel %vm2548_vm11, %v652_v49, -9e+15  ;;  %v655_v1 = vsel %vm623_vm14, %v607_v11, %v639_v36  ;;  %v654_v2 = vsel %vm622_vm0, %v606_v34, %v638_v50  ;;  %v641_v3 = vmul.f32 0.2, %v609_v51  ;;  %v2659_v50 = vld [vmem:[#allocation2 + $0x48] sm:$0xff] }
 0x15b   : > { %v640_v17 = vmul.f32 0.2, %v608_v52  ;;  %vm625_vm3 = vcmp.gt.f32.partialorder %v609_v51, 0.0  ;;  %vm624_vm4 = vcmp.gt.f32.partialorder %v608_v52, 0.0  ;;  %vm777_vm7 = vcmp.ne.s32.totalorder %v761_v56, 0 }
 0x15c   : > { %830 = vmax.xlane.f32.xlu1 %v2598_v63  ;;  %828 = vmax.xlane.f32.xlu0 %v2602_v0  ;;  %vm776_vm6 = vcmp.ne.s32.totalorder %v760_v57, 0  ;;  %v2608_v24 = vsel %vm2580_vm15, %v655_v1, -9e+15  ;;  %v2612_v4 = vsel %vm2584_vm1, %v654_v2, -9e+15  ;;  %v763_v5 = vunpack.c.0.s8 %v747_v59 }
 0x15d   : > { %v762_v6 = vunpack.c.0.s8 %v746_v60  ;;  %v643_v7 = vmul.f32 0.2, %v611_v61  ;;  %v642_v14 = vmul.f32 0.2, %v610_v62  ;;  %v657_v15 = vsel %vm625_vm3, %v609_v51, %v641_v3  ;;  %v2661_v51 = vld [vmem:[#allocation2 + $0x40] sm:$0xff]  ;;  %v807_v60 = vld [vmem:[#allocation2 + $0x58] sm:$0xff] }
 0x15e   : > { %v656_v16 = vsel %vm624_vm4, %v608_v52, %v640_v17  ;;  %vm627_vm5 = vcmp.gt.f32.partialorder %v611_v61, 0.0  ;;  %vm626_vm8 = vcmp.gt.f32.partialorder %v610_v62, 0.0  ;;  %v2616_v12 = vsel %vm777_vm7, %v657_v15, -9e+15 }
 0x15f   : > { %v2618_v19 = vsel %vm776_vm6, %v656_v16, -9e+15  ;;  %v659_v20 = vsel %vm627_vm5, %v611_v61, %v643_v7  ;;  %vm779_vm9 = vcmp.ne.s32.totalorder %v763_v5, 0  ;;  %v658_v21 = vsel %vm626_vm8, %v610_v62, %v642_v14  ;;  %v2671_v61 = vld [vmem:[#allocation2 + $0x50] sm:$0xff]  ;;  %v2679_v7 = vld [vmem:[#allocation2 + $0x60] sm:$0xff] }
 0x160   : > { %834 = vmax.xlane.f32.xlu1 %v2608_v24  ;;  %832 = vmax.xlane.f32.xlu0 %v2612_v4  ;;  %vm778_vm10 = vcmp.ne.s32.totalorder %v762_v6, 0  ;;  %v2622_v22 = vsel %vm779_vm9, %v659_v20, -9e+15  ;;  %vm1116_vm11 = vcmask 7168   ;;  %v809_v6 = vld [vmem:[#allocation2 + $0x68] sm:$0xff] }
 0x161   : > { %v2624_v8 = vsel %vm778_vm10, %v658_v21, -9e+15 }
 0x164   : > { %838 = vmax.xlane.f32.xlu1 %v2616_v12  ;;  %836 = vmax.xlane.f32.xlu0 %v2618_v19 }
 0x168   : > { %842 = vmax.xlane.f32.xlu1 %v2622_v22  ;;  %840 = vmax.xlane.f32.xlu0 %v2624_v8 }
 0x1d5   : > { %v815_v27 = vpop.xlane.xlu1 %814  ;;  %v813_v28 = vpop.xlane.xlu0 %812 }
 0x1d6   : > { %v2631_v30 = vmax.f32 %v2628_v23, %v815_v27  ;;  %v844_v31 = vmax.f32 %v796_v13, %v813_v28  ;;  %v2690_v28 = vld [vmem:[#allocation2 + $0x78] sm:$0xff] }
 0x1d8   : > { %1423 = vst.msk [vmem:[#allocation2 + $0x8] sm:$0xff] %vm1116_vm11, %v2631_v30  ;;  %1422 = vst.msk [vmem:[#allocation2] sm:$0xff] %vm1116_vm11, %v844_v31  ;;  %915 = vperm.xlu1 %1943, %v2631_v30   ;;  %910 = vperm.xlu0 %1942, %v844_v31   ;;  %v860_v47 = vsub.f32 %v796_v13, %v844_v31  ;;  %v861_v14 = vsub.f32 %v2628_v23, %v2631_v30  ;;  %v2692_v31 = vld [vmem:[#allocation2 + $0x70] sm:$0xff] }
 0x1d9   : > { %v819_v11 = vpop.xlane.xlu1 %818  ;;  %v817_v34 = vpop.xlane.xlu0 %816 }
 0x1da   : > { %v847_v35 = vmax.f32 %v799_v32, %v819_v11  ;;  %v2640_v38 = vmax.f32 %v2633_v9, %v817_v34  ;;  %v876_v55 = vmul.f32 1.442695, %v860_v47  ;;  %v878_v23 = vmul.f32 1.442695, %v861_v14 }
 0x1dc   : > { %1425 = vst.msk [vmem:[#allocation2 + $0x18] sm:$0xff] %vm1116_vm11, %v847_v35  ;;  %1424 = vst.msk [vmem:[#allocation2 + $0x10] sm:$0xff] %vm1116_vm11, %v2640_v38  ;;  %920 = vperm.xlu1 %1943, %v2640_v38   ;;  %v863_v56 = vsub.f32 %v799_v32, %v847_v35  ;;  %1944 = vpow2.f32 %v876_v55  ;;  %v862_v30 = vsub.f32 %v2633_v9, %v2640_v38 }
 0x1dd   : > { %v823_v41 = vpop.xlane.xlu1 %822  ;;  %v821_v42 = vpop.xlane.xlu0 %820 }
 0x1de   : > { %v849_v43 = vmax.f32 %v801_v39, %v823_v41  ;;  %v2649_v44 = vmax.f32 %v2642_v40, %v821_v42  ;;  %v882_v3 = vmul.f32 1.442695, %v863_v56  ;;  %v880_v38 = vmul.f32 1.442695, %v862_v30 }
 0x1e0   : > { %1427 = vst.msk [vmem:[#allocation2 + $0x28] sm:$0xff] %vm1116_vm11, %v849_v43  ;;  %1426 = vst.msk [vmem:[#allocation2 + $0x20] sm:$0xff] %vm1116_vm11, %v2649_v44  ;;  %925 = vperm.xlu1 %1943, %v847_v35   ;;  %v865_v62 = vsub.f32 %v801_v39, %v849_v43  ;;  %1946 = vpow2.f32 %v882_v3 }
 0x1e1   : > { %v827_v25 = vpop.xlane.xlu1 %826  ;;  %v825_v36 = vpop.xlane.xlu0 %824 }
 0x1e2   : > { %v851_v48 = vmax.f32 %v803_v26, %v827_v25  ;;  %v2657_v49 = vmax.f32 %v2651_v37, %v825_v36  ;;  %v886_v15 = vmul.f32 1.442695, %v865_v62 }
 0x1e4   : > { %1429 = vst.msk [vmem:[#allocation2 + $0x38] sm:$0xff] %vm1116_vm11, %v851_v48  ;;  %1428 = vst.msk [vmem:[#allocation2 + $0x30] sm:$0xff] %vm1116_vm11, %v2657_v49  ;;  %930 = vperm.xlu1 %1943, %v2649_v44   ;;  %v867_v21 = vsub.f32 %v803_v26, %v851_v48  ;;  %1948 = vpow2.f32 %v886_v15 }
 0x1e5   : > { %v831_v52 = vpop.xlane.xlu1 %830  ;;  %v829_v53 = vpop.xlane.xlu0 %828  ;;  %1950 = vpow2.f32 %v878_v23 }
 0x1e6   : > { %v853_v57 = vmax.f32 %v2659_v50, %v831_v52  ;;  %v2669_v59 = vmax.f32 %v2661_v51, %v829_v53  ;;  %v890_v34 = vmul.f32 1.442695, %v867_v21 }
 0x1e8   : > { %1431 = vst.msk [vmem:[#allocation2 + $0x48] sm:$0xff] %vm1116_vm11, %v853_v57  ;;  %1430 = vst.msk [vmem:[#allocation2 + $0x40] sm:$0xff] %vm1116_vm11, %v2669_v59  ;;  %955 = vperm.xlu0 %1942, %v853_v57   ;;  %935 = vperm.xlu1 %1943, %v849_v43   ;;  %v869_v35 = vsub.f32 %v2659_v50, %v853_v57  ;;  %v864_v43 = vsub.f32 %v2642_v40, %v2649_v44  ;;  %1952 = vpow2.f32 %v890_v34 }
 0x1e9   : > { %v835_v1 = vpop.xlane.xlu1 %834  ;;  %v833_v2 = vpop.xlane.xlu0 %832  ;;  %1954 = vpow2.f32 %v880_v38  ;;  %v868_v55 = vsub.f32 %v2661_v51, %v2669_v59 }
 0x1ea   : > { %v855_v17 = vmax.f32 %v807_v60, %v835_v1  ;;  %v2677_v5 = vmax.f32 %v2671_v61, %v833_v2  ;;  %v894_v26 = vmul.f32 1.442695, %v869_v35  ;;  %v2718_v36 = vpop.eup %1944  ;;  %v884_v47 = vmul.f32 1.442695, %v864_v43 }
 0x1ec   : > { %1433 = vst.msk [vmem:[#allocation2 + $0x58] sm:$0xff] %vm1116_vm11, %v855_v17  ;;  %1432 = vst.msk [vmem:[#allocation2 + $0x50] sm:$0xff] %vm1116_vm11, %v2677_v5  ;;  %965 = vperm.xlu0 %1942, %v855_v17   ;;  %940 = vperm.xlu1 %1943, %v2657_v49   ;;  %v871_v25 = vsub.f32 %v807_v60, %v855_v17  ;;  %1956 = vpow2.f32 %v894_v26  ;;  %v870_v57 = vsub.f32 %v2671_v61, %v2677_v5 }
 0x1ed   : > { %v839_v16 = vpop.xlane.xlu1 %838  ;;  %v837_v20 = vpop.xlane.xlu0 %836  ;;  %1958 = vpow2.f32 %v884_v47 }
 0x1ee   : > { %v857_v13 = vmax.f32 %v809_v6, %v839_v16  ;;  %v2688_v27 = vmax.f32 %v2679_v7, %v837_v20  ;;  %v898_v50 = vmul.f32 1.442695, %v871_v25  ;;  %v2724_v53 = vpop.eup %1946 }
 0x1f0   : > { %1435 = vst.msk [vmem:[#allocation2 + $0x68] sm:$0xff] %vm1116_vm11, %v857_v13  ;;  %1434 = vst.msk [vmem:[#allocation2 + $0x60] sm:$0xff] %vm1116_vm11, %v2688_v27  ;;  %975 = vperm.xlu0 %1942, %v857_v13   ;;  %945 = vperm.xlu1 %1943, %v851_v48   ;;  %v866_v48 = vsub.f32 %v2651_v37, %v2657_v49  ;;  %v873_v52 = vsub.f32 %v809_v6, %v857_v13  ;;  %1960 = vpow2.f32 %v898_v50 }
 0x1f1   : > { %v843_v32 = vpop.xlane.xlu1 %842  ;;  %v841_v11 = vpop.xlane.xlu0 %840  ;;  %v892_v49 = vmul.f32 1.442695, %v868_v55  ;;  %v872_v62 = vsub.f32 %v2679_v7, %v2688_v27 }
 0x1f2   : > { %v2701_v39 = vmax.f32 %v2690_v28, %v843_v32  ;;  %v2704_v41 = vmax.f32 %v2692_v31, %v841_v11  ;;  %v888_v40 = vmul.f32 1.442695, %v866_v48  ;;  %v2728_v44 = vpop.eup %1948  ;;  %v902_v56 = vmul.f32 1.442695, %v873_v52 }
 0x1f3   : > { %v2734_v37 = vpop.eup %1950  ;;  %v900_v2 = vmul.f32 1.442695, %v872_v62 }
 0x1f4   : > { %v875_v42 = vsub.f32 %v2690_v28, %v2701_v39  ;;  %1437 = vst.msk [vmem:[#allocation2 + $0x78] sm:$0xff] %vm1116_vm11, %v2701_v39  ;;  %v874_v9 = vsub.f32 %v2692_v31, %v2704_v41  ;;  %1436 = vst.msk [vmem:[#allocation2 + $0x70] sm:$0xff] %vm1116_vm11, %v2704_v41  ;;  %985 = vperm.xlu0 %1942, %v2701_v39   ;;  %950 = vperm.xlu1 %1943, %v2669_v59   ;;  %1962 = vpow2.f32 %v888_v40 }
 0x1f5   : > { %1964 = vpow2.f32 %v902_v56  ;;  %v2738_v60 = vpop.eup %1952  ;;  %v896_v59 = vmul.f32 1.442695, %v870_v57 }
 0x1f6   : > { %v2742_v51 = vpop.eup %1954  ;;  %1966 = vpow2.f32 %v892_v49 }
 0x1f7   : > { %1968 = vpow2.f32 %v896_v59 }
 0x1f8   : > { %1151 = vperm.xlu0 %1942, %v2718_v36   ;;  %960 = vperm.xlu1 %1943, %v2677_v5   ;;  %1970 = vpow2.f32 %v900_v2 }
 0x1f9   : > { %v2746_v1 = vpop.eup %1956 }
 0x1fa   : > { %v2750_v61 = vpop.eup %1958 }
 0x1fc   : > { %1166 = vperm.xlu0 %1942, %v2724_v53   ;;  %970 = vperm.xlu1 %1943, %v2688_v27  }
 0x1fd   : > { %v2752_v3 = vpop.eup %1960 }
 0x200   : > { %1176 = vperm.xlu0 %1942, %v2728_v44   ;;  %980 = vperm.xlu1 %1943, %v2704_v41  }
 0x201   : > { %v2756_v17 = vpop.eup %1962 }
 0x202   : > { %v2758_v5 = vpop.eup %1964 }
 0x203   : > { %v2762_v6 = vpop.eup %1966 }
 0x204   : > { %1186 = vperm.xlu0 %1942, %v2738_v60   ;;  %1156 = vperm.xlu1 %1943, %v2734_v37   ;;  %v2765_v7 = vpop.eup %1968 }
 0x205   : > { %v2768_v14 = vpop.eup %1970 }
 0x208   : > { %1196 = vperm.xlu0 %1942, %v2746_v1   ;;  %1161 = vperm.xlu1 %1943, %v2742_v51  }
 0x20c   : > { %1206 = vperm.xlu0 %1942, %v2752_v3   ;;  %1171 = vperm.xlu1 %1943, %v2750_v61  }
 0x210   : > { %1216 = vperm.xlu0 %1942, %v2758_v5   ;;  %1181 = vperm.xlu1 %1943, %v2756_v17  }
 0x214   : > { %1191 = vperm.xlu1 %1943, %v2762_v6  }
 0x218   : > { %1201 = vperm.xlu1 %1943, %v2765_v7  }
 0x21c   : > { %1211 = vperm.xlu1 %1943, %v2768_v14  }
 0x253   : > { %v916_v15 = vpop.permute.xlu1 %915  ;;  %v911_v16 = vpop.permute.xlu0 %910 }
 0x254   : > { %v989_v20 = vsub.f32 %v2485_v58, %v916_v15  ;;  %v988_v21 = vsub.f32 %v2481_v54, %v911_v16 }
 0x256   : > { %v1006_v13 = vmul.f32 1.442695, %v989_v20  ;;  %v1004_v27 = vmul.f32 1.442695, %v988_v21 }
 0x257   : > { %v921_v23 = vpop.permute.xlu1 %920 }
 0x258   : > { %1972 = vpow2.f32 %v1006_v13  ;;  %v990_v30 = vsub.f32 %v2512_v18, %v921_v23 }
 0x259   : > { %1974 = vpow2.f32 %v1004_v27 }
 0x25a   : > { %v1008_v32 = vmul.f32 1.442695, %v990_v30 }
 0x25b   : > { %v926_v11 = vpop.permute.xlu1 %925 }
 0x25c   : > { %1976 = vpow2.f32 %v1008_v32  ;;  %v991_v34 = vsub.f32 %v2516_v10, %v926_v11 }
 0x25e   : > { %v1010_v35 = vmul.f32 1.442695, %v991_v34 }
 0x25f   : > { %v931_v38 = vpop.permute.xlu1 %930 }
 0x260   : > { %1978 = vpow2.f32 %v1010_v35  ;;  %v992_v43 = vsub.f32 %v2540_v33, %v931_v38 }
 0x262   : > { %v1012_v58 = vmul.f32 1.442695, %v992_v43 }
 0x263   : > { %v936_v26 = vpop.permute.xlu1 %935  ;;  %v956_v25 = vpop.permute.xlu0 %955 }
 0x264   : > { %1980 = vpow2.f32 %v1012_v58  ;;  %v993_v54 = vsub.f32 %v2532_v29, %v936_v26  ;;  %v997_v49 = vsub.f32 %v2598_v63, %v956_v25 }
 0x265   : > { %v1973_v47 = vpop.eup %1972 }
 0x266   : > { %v1975_v48 = vpop.eup %1974  ;;  %v1014_v18 = vmul.f32 1.442695, %v993_v54  ;;  %1070 = vadd.xlane.f32.xlu0 %v1973_v47  ;;  %v1022_v15 = vmul.f32 1.442695, %v997_v49 }
 0x267   : > { %1068 = vadd.xlane.f32.xlu1 %v1975_v48  ;;  %1856 = vmatprep.mubr.f32.mxu1 %v1975_v48  ;;  %v941_v50 = vpop.permute.xlu1 %940  ;;  %v966_v33 = vpop.permute.xlu0 %965 }
 0x268   : > { %1982 = vpow2.f32 %v1014_v18  ;;  %v994_v10 = vsub.f32 %v2573_v46, %v941_v50  ;;  %1857 = vmatmul.mubr.f32.vlgmr.msra.gmra.mxu1 %v1973_v47  ;;  %v999_v16 = vsub.f32 %v2608_v24, %v966_v33  ;;  %v904_v18 = vmul.f32 1.442695, %v874_v9 }
 0x269   : > { %v1977_v52 = vpop.eup %1976  ;;  %v906_v50 = vmul.f32 1.442695, %v875_v42 }
 0x26a   : > { %v1016_v40 = vmul.f32 1.442695, %v994_v10  ;;  %1072 = vadd.xlane.f32.xlu0 %v1977_v52  ;;  %1859 = vmatprep.mubr.f32.mxu1 %v1977_v52  ;;  %v1026_v13 = vmul.f32 1.442695, %v999_v16 }
 0x26b   : > { %v946_v55 = vpop.permute.xlu1 %945  ;;  %v976_v62 = vpop.permute.xlu0 %975 }
 0x26c   : > { %1984 = vpow2.f32 %v1016_v40  ;;  %v995_v29 = vsub.f32 %v2569_v45, %v946_v55  ;;  %v1001_v27 = vsub.f32 %v2616_v12, %v976_v62 }
 0x26d   : > { %v1979_v56 = vpop.eup %1978 }
 0x26e   : > { %v1018_v57 = vmul.f32 1.442695, %v995_v29  ;;  %1074 = vadd.xlane.f32.xlu1 %v1979_v56  ;;  %1860 = vmatmul.mubr.f32.gmra.mxu1 %v1979_v56  ;;  %v1030_v11 = vmul.f32 1.442695, %v1001_v27 }
 0x26f   : > { %v951_v59 = vpop.permute.xlu1 %950  ;;  %v986_v23 = vpop.permute.xlu0 %985 }
 0x270   : > { %1986 = vpow2.f32 %v1018_v57  ;;  %v996_v46 = vsub.f32 %v2602_v0, %v951_v59  ;;  %v1003_v34 = vsub.f32 %v2622_v22, %v986_v23  ;;  %v1037_v59 = vld [vmem:[#allocation3 + $0x8] sm:$0xff]  ;;  %v1039_v23 = vld [vmem:[#allocation3 + $0x18] sm:$0xff] }
 0x271   : > { %v1981_v2 = vpop.eup %1980 }
 0x272   : > { %v1020_v20 = vmul.f32 1.442695, %v996_v46  ;;  %1076 = vadd.xlane.f32.xlu0 %v1981_v2  ;;  %1862 = vmatprep.mubr.f32.mxu1 %v1981_v2  ;;  %v1034_v43 = vmul.f32 1.442695, %v1003_v34  ;;  %v1036_v46 = vld [vmem:[#allocation3] sm:$0xff]  ;;  %v1053_v2 = vmul.f32 %v2734_v37, %v1037_v59  ;;  %v1055_v37 = vmul.f32 %v2724_v53, %v1039_v23  ;;  %v1041_v34 = vld [vmem:[#allocation3 + $0x28] sm:$0xff] }
 0x273   : > { %v961_v21 = vpop.permute.xlu1 %960  ;;  %v2799_v31 = vpop.permute.xlu0 %1151  ;;  %v1051_v23 = vld [vmem:[#allocation3 + $0x78] sm:$0xff] }
 0x274   : > { %1988 = vpow2.f32 %v1020_v20  ;;  %v998_v45 = vsub.f32 %v2612_v4, %v961_v21  ;;  %v1038_v20 = vld [vmem:[#allocation3 + $0x10] sm:$0xff] }
 0x275   : > { %v1983_v63 = vpop.eup %1982  ;;  %1990 = vpow2.f32 %v1022_v15  ;;  %v1052_v15 = vmul.f32 %v2718_v36, %v1036_v46  ;;  %v1040_v36 = vld [vmem:[#allocation3 + $0x20] sm:$0xff] }
 0x276   : > { %v1024_v30 = vmul.f32 1.442695, %v998_v45  ;;  %1078 = vadd.xlane.f32.xlu1 %v1983_v63  ;;  %1863 = vmatmul.mubr.f32.gmra.mxu1 %v1983_v63 }
 0x277   : > { %v971_v0 = vpop.permute.xlu1 %970  ;;  %v2803_v9 = vpop.permute.xlu0 %1166 }
 0x278   : > { %1992 = vpow2.f32 %v1024_v30  ;;  %v1000_v24 = vsub.f32 %v2618_v19, %v971_v0 }
 0x279   : > { %v1985_v32 = vpop.eup %1984  ;;  %1994 = vpow2.f32 %v1026_v13  ;;  %v1054_v13 = vmul.f32 %v2742_v51, %v1038_v20  ;;  %v1057_v51 = vmul.f32 %v2728_v44, %v1041_v34  ;;  %v1049_v20 = vld [vmem:[#allocation3 + $0x68] sm:$0xff] }
 0x27a   : > { %v1028_v35 = vmul.f32 1.442695, %v1000_v24  ;;  %1080 = vadd.xlane.f32.xlu0 %v1985_v32  ;;  %1865 = vmatprep.mubr.f32.mxu1 %v1985_v32  ;;  %v1056_v32 = vmul.f32 %v2750_v61, %v1040_v36 }
 0x27b   : > { %v981_v4 = vpop.permute.xlu1 %980  ;;  %v2807_v28 = vpop.permute.xlu0 %1176 }
 0x27c   : > { %1996 = vpow2.f32 %v1028_v35  ;;  %v1002_v12 = vsub.f32 %v2624_v8, %v981_v4 }
 0x27d   : > { %v1987_v38 = vpop.eup %1986  ;;  %1998 = vpow2.f32 %v1030_v11 }
 0x27e   : > { %v1032_v58 = vmul.f32 1.442695, %v1002_v12  ;;  %1082 = vadd.xlane.f32.xlu1 %v1987_v38  ;;  %1866 = vmatmul.mubr.f32.gmra.mxu1 %v1987_v38  ;;  %v1042_v12 = vld [vmem:[#allocation3 + $0x30] sm:$0xff] }
 0x27f   : > { %v2801_v41 = vpop.permute.xlu1 %1156  ;;  %v2811_v42 = vpop.permute.xlu0 %1186  ;;  %v1058_v53 = vmul.f32 %v2756_v17, %v1042_v12  ;;  %v1135_v12 = vld [vmem:[#allocation4 + $0x10] sm:$0xff] }
 0x280   : > { %2000 = vpow2.f32 %v1032_v58  ;;  %v1043_v58 = vld [vmem:[#allocation3 + $0x38] sm:$0xff] }
 0x281   : > { %v1989_v19 = vpop.eup %1988  ;;  %2002 = vpow2.f32 %v1034_v43  ;;  %v1059_v61 = vmul.f32 %v2738_v60, %v1043_v58 }
 0x282   : > { %v1991_v26 = vpop.eup %1990  ;;  %1084 = vadd.xlane.f32.xlu0 %v1989_v19  ;;  %1868 = vmatprep.mubr.f32.mxu1 %v1989_v19  ;;  %2004 = vpow2.f32 %v904_v18 }
 0x283   : > { %1086 = vadd.xlane.f32.xlu1 %v1991_v26  ;;  %1869 = vmatmul.mubr.f32.gmra.mxu1 %v1991_v26  ;;  %2006 = vpow2.f32 %v906_v50  ;;  %v2805_v40 = vpop.permute.xlu1 %1161  ;;  %v2815_v55 = vpop.permute.xlu0 %1196  ;;  %v1047_v50 = vld [vmem:[#allocation3 + $0x58] sm:$0xff] }
 0x284   : > { %v1063_v46 = vmul.f32 %v2752_v3, %v1047_v50 }
 0x285   : > { %v1993_v22 = vpop.eup %1992 }
 0x286   : > { %v1995_v54 = vpop.eup %1994  ;;  %1088 = vadd.xlane.f32.xlu0 %v1993_v22  ;;  %1871 = vmatprep.mubr.f32.mxu1 %v1993_v22  ;;  %v1044_v22 = vld [vmem:[#allocation3 + $0x40] sm:$0xff] }
 0x287   : > { %1090 = vadd.xlane.f32.xlu1 %v1995_v54  ;;  %1872 = vmatmul.mubr.f32.gmra.mxu1 %v1995_v54  ;;  %v2809_v39 = vpop.permute.xlu1 %1171  ;;  %v2819_v56 = vpop.permute.xlu0 %1206  ;;  %v1060_v44 = vmul.f32 %v2762_v6, %v1044_v22 }
 0x289   : > { %v1997_v8 = vpop.eup %1996 }
 0x28a   : > { %v1999_v25 = vpop.eup %1998  ;;  %1092 = vadd.xlane.f32.xlu0 %v1997_v8  ;;  %1874 = vmatprep.mubr.f32.mxu1 %v1997_v8  ;;  %v1045_v8 = vld [vmem:[#allocation3 + $0x48] sm:$0xff] }
 0x28b   : > { %1094 = vadd.xlane.f32.xlu1 %v1999_v25  ;;  %1875 = vmatmul.mubr.f32.gmra.mxu1 %v1999_v25  ;;  %v2813_v33 = vpop.permute.xlu1 %1181  ;;  %v2823_v57 = vpop.permute.xlu0 %1216  ;;  %v1061_v25 = vmul.f32 %v2746_v1, %v1045_v8 }
 0x28d   : > { %v2001_v47 = vpop.eup %2000 }
 0x28e   : > { %v2003_v48 = vpop.eup %2002  ;;  %1096 = vadd.xlane.f32.xlu0 %v2001_v47  ;;  %1877 = vmatprep.mubr.f32.mxu1 %v2001_v47 }
 0x28f   : > { %1098 = vadd.xlane.f32.xlu1 %v2003_v48  ;;  %1878 = vmatmul.mubr.f32.gmra.mxu1 %v2003_v48  ;;  %v2793_v10 = vpop.eup %2004  ;;  %v2817_v29 = vpop.permute.xlu1 %1191  ;;  %v1046_v48 = vld [vmem:[#allocation3 + $0x50] sm:$0xff] }
 0x290   : > { %v2796_v52 = vpop.eup %2006  ;;  %v1062_v60 = vmul.f32 %v2765_v7, %v1046_v48  ;;  %v1050_v7 = vld [vmem:[#allocation3 + $0x70] sm:$0xff] }
 0x293   : > { %v2821_v49 = vpop.permute.xlu1 %1201 }
 0x297   : > { %v2825_v62 = vpop.permute.xlu1 %1211 }
 0x2a0   : > { %1221 = vperm.xlu1 %1943, %v2793_v10  }
 0x2a4   : > { %1226 = vperm.xlu0 %1942, %v2796_v52  }
 0x2ef   : > { %v1071_v16 = vpop.xlane.xlu0 %1070 }
 0x2f0   : > { %v1069_v21 = vpop.xlane.xlu1 %1068  ;;  %v1101_v45 = vadd.f32 %v1071_v16, %v1053_v2 }
 0x2f1   : > { %v1100_v63 = vadd.f32 %v1069_v21, %v1052_v15  ;;  %v1048_v15 = vld [vmem:[#allocation3 + $0x60] sm:$0xff] }
 0x2f2   : > { %1118 = vst.msk [vmem:[#allocation3 + $0x8] sm:$0xff] %vm1116_vm11, %v1101_v45  ;;  %v1064_v21 = vmul.f32 %v2768_v14, %v1048_v15  ;;  %v1065_v45 = vmul.f32 %v2758_v5, %v1049_v20  ;;  %v1134_v5 = vld [vmem:[#allocation4 + $0x8] sm:$0xff] }
 0x2f3   : > { %1117 = vst.msk [vmem:[#allocation3] sm:$0xff] %vm1116_vm11, %v1100_v63  ;;  %v1073_v27 = vpop.xlane.xlu0 %1072 }
 0x2f4   : > { %v1102_v30 = vadd.f32 %v1073_v27, %v1054_v13 }
 0x2f6   : > { %1119 = vst.msk [vmem:[#allocation3 + $0x10] sm:$0xff] %vm1116_vm11, %v1102_v30  ;;  %v1066_v30 = vmul.f32 %v2793_v10, %v1050_v7 }
 0x2f7   : > { %v1075_v0 = vpop.xlane.xlu1 %1074 }
 0x2f8   : > { %v1103_v24 = vadd.f32 %v1075_v0, %v1055_v37  ;;  %v1067_v37 = vmul.f32 %v2796_v52, %v1051_v23 }
 0x2fa   : > { %1120 = vst.msk [vmem:[#allocation3 + $0x18] sm:$0xff] %vm1116_vm11, %v1103_v24 }
 0x2fb   : > { %v1077_v11 = vpop.xlane.xlu0 %1076 }
 0x2fc   : > { %v1104_v35 = vadd.f32 %v1077_v11, %v1056_v32  ;;  %v1133_v32 = vld [vmem:[#allocation4] sm:$0xff]  ;;  %v1230_v11 = vmul.f32 %v2801_v41, %v1134_v5 }
 0x2fe   : > { %1121 = vst.msk [vmem:[#allocation3 + $0x20] sm:$0xff] %vm1116_vm11, %v1104_v35  ;;  %v1229_v35 = vmul.f32 %v2799_v31, %v1133_v32  ;;  %v1138_v31 = vld [vmem:[#allocation4 + $0x28] sm:$0xff] }
 0x2ff   : > { %v1079_v4 = vpop.xlane.xlu1 %1078 }
 0x300   : > { %v1105_v38 = vadd.f32 %v1079_v4, %v1057_v51  ;;  %v1136_v51 = vld [vmem:[#allocation4 + $0x18] sm:$0xff] }
 0x302   : > { %1122 = vst.msk [vmem:[#allocation3 + $0x28] sm:$0xff] %vm1116_vm11, %v1105_v38  ;;  %v1232_v38 = vmul.f32 %v2803_v9, %v1136_v51 }
 0x303   : > { %v1081_v43 = vpop.xlane.xlu0 %1080 }
 0x304   : > { %v1106_v19 = vadd.f32 %v1081_v43, %v1058_v53  ;;  %v1231_v43 = vmul.f32 %v2805_v40, %v1135_v12  ;;  %v1140_v40 = vld [vmem:[#allocation4 + $0x38] sm:$0xff] }
 0x306   : > { %1123 = vst.msk [vmem:[#allocation3 + $0x30] sm:$0xff] %vm1116_vm11, %v1106_v19 }
 0x307   : > { %v1083_v26 = vpop.xlane.xlu1 %1082 }
 0x308   : > { %v1107_v54 = vadd.f32 %v1083_v26, %v1059_v61  ;;  %v1137_v61 = vld [vmem:[#allocation4 + $0x20] sm:$0xff]  ;;  %v1234_v26 = vmul.f32 %v2807_v28, %v1138_v31 }
 0x30a   : > { %1124 = vst.msk [vmem:[#allocation3 + $0x38] sm:$0xff] %vm1116_vm11, %v1107_v54  ;;  %v1233_v54 = vmul.f32 %v2809_v39, %v1137_v61 }
 0x30b   : > { %v1085_v47 = vpop.xlane.xlu0 %1084 }
 0x30c   : > { %v1087_v17 = vpop.xlane.xlu1 %1086  ;;  %v1108_v18 = vadd.f32 %v1085_v47, %v1060_v44  ;;  %v1236_v47 = vmul.f32 %v2811_v42, %v1140_v40  ;;  %v1143_v42 = vld [vmem:[#allocation4 + $0x50] sm:$0xff] }
 0x30d   : > { %v1109_v59 = vadd.f32 %v1087_v17, %v1061_v25  ;;  %v1139_v25 = vld [vmem:[#allocation4 + $0x30] sm:$0xff]  ;;  %v1142_v17 = vld [vmem:[#allocation4 + $0x48] sm:$0xff] }
 0x30e   : > { %1125 = vst.msk [vmem:[#allocation3 + $0x40] sm:$0xff] %vm1116_vm11, %v1108_v18  ;;  %v1235_v18 = vmul.f32 %v2813_v33, %v1139_v25 }
 0x30f   : > { %1126 = vst.msk [vmem:[#allocation3 + $0x48] sm:$0xff] %vm1116_vm11, %v1109_v59  ;;  %v1089_v2 = vpop.xlane.xlu0 %1088  ;;  %v1141_v59 = vld [vmem:[#allocation4 + $0x40] sm:$0xff] }
 0x310   : > { %v1091_v16 = vpop.xlane.xlu1 %1090  ;;  %v1110_v6 = vadd.f32 %v1089_v2, %v1062_v60  ;;  %v1238_v60 = vmul.f32 %v2815_v55, %v1142_v17  ;;  %v1237_v15 = vmul.f32 %v2817_v29, %v1141_v59 }
 0x311   : > { %v1111_v1 = vadd.f32 %v1091_v16, %v1063_v46  ;;  %v1144_v46 = vld [vmem:[#allocation4 + $0x58] sm:$0xff] }
 0x312   : > { %1127 = vst.msk [vmem:[#allocation3 + $0x50] sm:$0xff] %vm1116_vm11, %v1110_v6  ;;  %v1240_v20 = vmul.f32 %v2819_v56, %v1144_v46 }
 0x313   : > { %1128 = vst.msk [vmem:[#allocation3 + $0x58] sm:$0xff] %vm1116_vm11, %v1111_v1  ;;  %v1093_v63 = vpop.xlane.xlu0 %1092  ;;  %v1146_v1 = vld [vmem:[#allocation4 + $0x68] sm:$0xff] }
 0x314   : > { %v1095_v13 = vpop.xlane.xlu1 %1094  ;;  %v1112_v27 = vadd.f32 %v1093_v63, %v1064_v21  ;;  %v1145_v63 = vld [vmem:[#allocation4 + $0x60] sm:$0xff] }
 0x315   : > { %v1113_v3 = vadd.f32 %v1095_v13, %v1065_v45  ;;  %v1239_v45 = vmul.f32 %v2821_v49, %v1143_v42  ;;  %v1242_v13 = vmul.f32 %v2823_v57, %v1146_v1 }
 0x316   : > { %1129 = vst.msk [vmem:[#allocation3 + $0x60] sm:$0xff] %vm1116_vm11, %v1112_v27  ;;  %v1148_v27 = vld [vmem:[#allocation4 + $0x78] sm:$0xff] }
 0x317   : > { %1130 = vst.msk [vmem:[#allocation3 + $0x68] sm:$0xff] %vm1116_vm11, %v1113_v3  ;;  %v1097_v0 = vpop.xlane.xlu0 %1096  ;;  %v1241_v3 = vmul.f32 %v2825_v62, %v1145_v63 }
 0x318   : > { %v1099_v14 = vpop.xlane.xlu1 %1098  ;;  %v1114_v36 = vadd.f32 %v1097_v0, %v1066_v30 }
 0x319   : > { %v1115_v24 = vadd.f32 %v1099_v14, %v1067_v37  ;;  %v1147_v37 = vld [vmem:[#allocation4 + $0x70] sm:$0xff] }
 0x31a   : > { %1131 = vst.msk [vmem:[#allocation3 + $0x70] sm:$0xff] %vm1116_vm11, %v1114_v36 }
 0x31b   : > { %1132 = vst.msk [vmem:[#allocation3 + $0x78] sm:$0xff] %vm1116_vm11, %v1115_v24 }
 0x31c   : > { %v1222_v49 = vpop.permute.xlu1 %1221 }
 0x31d   : > { %v1243_v57 = vmul.f32 %v1222_v49, %v1147_v37 }
 0x31f   : > { %v1227_v23 = vpop.permute.xlu0 %1226 }
 0x320   : > { %v1244_v14 = vmul.f32 %v1227_v23, %v1148_v27 }
 0x328   : > { %v1858_v34 = vpop.f32.mrf.mxu1 }
 0x329   : > { %v1391_v10 = vadd.f32 %v1858_v34, %v1230_v11 }
 0x32a   : > { %v1311_v4 = vpop.f32.mrf.mxu1 }
 0x32b   : > { %1407 = vst.msk [vmem:[#allocation4 + $0x8] sm:$0xff] %vm421_vm2, %v1391_v10  ;;  %v1390_v52 = vadd.f32 %v1311_v4, %v1229_v35 }
 0x32d   : > { %1406 = vst.msk [vmem:[#allocation4] sm:$0xff] %vm421_vm2, %v1390_v52 }
 0x32e   : > { %v1861_v53 = vpop.f32.mrf.mxu1 }
 0x32f   : > { %v1393_v58 = vadd.f32 %v1861_v53, %v1232_v38 }
 0x330   : > { %v1321_v19 = vpop.f32.mrf.mxu1 }
 0x331   : > { %1409 = vst.msk [vmem:[#allocation4 + $0x18] sm:$0xff] %vm421_vm2, %v1393_v58  ;;  %v1392_v41 = vadd.f32 %v1321_v19, %v1231_v43 }
 0x333   : > { %1408 = vst.msk [vmem:[#allocation4 + $0x10] sm:$0xff] %vm421_vm2, %v1392_v41 }
 0x336   : > { %v1864_v22 = vpop.f32.mrf.mxu1 }
 0x337   : > { %v1395_v9 = vadd.f32 %v1864_v22, %v1234_v26 }
 0x338   : > { %v1331_v8 = vpop.f32.mrf.mxu1 }
 0x339   : > { %1411 = vst.msk [vmem:[#allocation4 + $0x28] sm:$0xff] %vm421_vm2, %v1395_v9  ;;  %v1394_v44 = vadd.f32 %v1331_v8, %v1233_v54 }
 0x33b   : > { %1410 = vst.msk [vmem:[#allocation4 + $0x20] sm:$0xff] %vm421_vm2, %v1394_v44 }
 0x33e   : > { %v1867_v48 = vpop.f32.mrf.mxu1 }
 0x33f   : > { %v1397_v50 = vadd.f32 %v1867_v48, %v1236_v47 }
 0x340   : > { %v1341_v28 = vpop.f32.mrf.mxu1 }
 0x341   : > { %1413 = vst.msk [vmem:[#allocation4 + $0x38] sm:$0xff] %vm421_vm2, %v1397_v50  ;;  %v1396_v39 = vadd.f32 %v1341_v28, %v1235_v18 }
 0x343   : > { %1412 = vst.msk [vmem:[#allocation4 + $0x30] sm:$0xff] %vm421_vm2, %v1396_v39  ;;  %v1870_v2 = vpop.f32.mrf.mxu1 }
 0x344   : > { %v1399_v16 = vadd.f32 %v1870_v2, %v1238_v60 }
 0x345   : > { %v1351_v6 = vpop.f32.mrf.mxu1 }
 0x346   : > { %1415 = vst.msk [vmem:[#allocation4 + $0x48] sm:$0xff] %vm421_vm2, %v1399_v16  ;;  %v1398_v33 = vadd.f32 %v1351_v6, %v1237_v15 }
 0x347   : > { %v1873_v21 = vpop.f32.mrf.mxu1 }
 0x348   : > { %1414 = vst.msk [vmem:[#allocation4 + $0x40] sm:$0xff] %vm421_vm2, %v1398_v33  ;;  %v1401_v55 = vadd.f32 %v1873_v21, %v1240_v20 }
 0x349   : > { %v1361_v7 = vpop.f32.mrf.mxu1 }
 0x34a   : > { %1417 = vst.msk [vmem:[#allocation4 + $0x58] sm:$0xff] %vm421_vm2, %v1401_v55  ;;  %v1400_v29 = vadd.f32 %v1361_v7, %v1239_v45 }
 0x34b   : > { %v1876_v56 = vpop.f32.mrf.mxu1 }
 0x34c   : > { %1416 = vst.msk [vmem:[#allocation4 + $0x50] sm:$0xff] %vm421_vm2, %v1400_v29  ;;  %v1403_v30 = vadd.f32 %v1876_v56, %v1242_v13 }
 0x34d   : > { %v1371_v0 = vpop.f32.mrf.mxu1 }
 0x34e   : > { %1419 = vst.msk [vmem:[#allocation4 + $0x68] sm:$0xff] %vm421_vm2, %v1403_v30  ;;  %v1402_v36 = vadd.f32 %v1371_v0, %v1241_v3 }
 0x34f   : > { %v1879_v24 = vpop.f32.mrf.mxu1 }
 0x350   : > { %1418 = vst.msk [vmem:[#allocation4 + $0x60] sm:$0xff] %vm421_vm2, %v1402_v36  ;;  %v1405_v5 = vadd.f32 %v1879_v24, %v1244_v14  ;;  %1441 = sbr.rel (%p1736_p13) target bundleno = 1024 (0x400), region = 82 }
 0x351   : > { %v1381_v32 = vpop.f32.mrf.mxu1 }
 0x352   : > { %1421 = vst.msk [vmem:[#allocation4 + $0x78] sm:$0xff] %vm421_vm2, %v1405_v5  ;;  %v1404_v11 = vadd.f32 %v1381_v32, %v1243_v57 }
 0x354   : > { %1420 = vst.msk [vmem:[#allocation4 + $0x70] sm:$0xff] %vm421_vm2, %v1404_v11 }
 0x355   : > { %v1460_v62 = vld [vmem:[#allocation3 + $0x10] sm:$0xff]  ;;  %v1458_v34 = vld [vmem:[#allocation3] sm:$0xff]  ;;  %v1461_v35 = vld [vmem:[#allocation3 + $0x18] sm:$0xff]  ;;  %v2103_v10 = vmov 0  }
 0x356   : > { %2009 = vset.pattern.permute.xlu1 %v2103_v10  ;;  %2008 = vset.pattern.permute.xlu0 %v2103_v10  ;;  %2010 = vrcp.f32 %v1460_v62  ;;  %v1459_v51 = vld [vmem:[#allocation3 + $0x8] sm:$0xff]  ;;  %v1462_v52 = vld [vmem:[#allocation3 + $0x20] sm:$0xff]  ;;  %v1465_v12 = vld [vmem:[#allocation3 + $0x38] sm:$0xff] }
 0x357   : > { %2012 = vrcp.f32 %v1458_v34  ;;  %v1463_v4 = vld [vmem:[#allocation3 + $0x28] sm:$0xff]  ;;  %v1464_v38 = vld [vmem:[#allocation3 + $0x30] sm:$0xff]  ;;  %v1466_v43 = vld [vmem:[#allocation3 + $0x40] sm:$0xff] }
 0x358   : > { %2014 = vrcp.f32 %v1461_v35  ;;  %v1467_v53 = vld [vmem:[#allocation3 + $0x48] sm:$0xff]  ;;  %v1469_v31 = vld [vmem:[#allocation3 + $0x58] sm:$0xff]  ;;  %v1468_v26 = vld [vmem:[#allocation3 + $0x50] sm:$0xff] }
 0x359   : > { %2016 = vrcp.f32 %v1459_v51  ;;  %v1471_v54 = vld [vmem:[#allocation3 + $0x68] sm:$0xff]  ;;  %v1470_v8 = vld [vmem:[#allocation3 + $0x60] sm:$0xff]  ;;  %v1473_v40 = vld [vmem:[#allocation3 + $0x78] sm:$0xff] }
 0x35a   : > { %2018 = vrcp.f32 %v1463_v4  ;;  %v1472_v47 = vld [vmem:[#allocation3 + $0x70] sm:$0xff]  ;;  %v1442_v2 = vld [vmem:[#allocation4] sm:$0xff]  ;;  %v1445_v20 = vld [vmem:[#allocation4 + $0x18] sm:$0xff] }
 0x35b   : > { %2020 = vrcp.f32 %v1462_v52  ;;  %v1444_v46 = vld [vmem:[#allocation4 + $0x10] sm:$0xff]  ;;  %v1443_v33 = vld [vmem:[#allocation4 + $0x8] sm:$0xff]  ;;  %v1446_v7 = vld [vmem:[#allocation4 + $0x20] sm:$0xff] }
 0x35c   : > { %2022 = vrcp.f32 %v1465_v12  ;;  %v1447_v63 = vld [vmem:[#allocation4 + $0x28] sm:$0xff]  ;;  %v1449_v56 = vld [vmem:[#allocation4 + $0x38] sm:$0xff]  ;;  %v1448_v3 = vld [vmem:[#allocation4 + $0x30] sm:$0xff] }
 0x35d   : > { %2024 = vrcp.f32 %v1464_v38  ;;  %v1451_v14 = vld [vmem:[#allocation4 + $0x48] sm:$0xff]  ;;  %v1450_v36 = vld [vmem:[#allocation4 + $0x40] sm:$0xff]  ;;  %v1453_v11 = vld [vmem:[#allocation4 + $0x58] sm:$0xff] }
 0x35e   : > { %2026 = vrcp.f32 %v1467_v53  ;;  %v1452_v62 = vld [vmem:[#allocation4 + $0x50] sm:$0xff]  ;;  %v1455_v4 = vld [vmem:[#allocation4 + $0x68] sm:$0xff]  ;;  %v1454_v52 = vld [vmem:[#allocation4 + $0x60] sm:$0xff] }
 0x35f   : > { %2028 = vrcp.f32 %v1466_v43 }
 0x360   : > { %2030 = vrcp.f32 %v1469_v31 }
 0x361   : > { %2032 = vrcp.f32 %v1468_v26 }
 0x362   : > { %2034 = vrcp.f32 %v1471_v54 }
 0x363   : > { %v2011_v58 = vpop.eup %2010  ;;  %2036 = vrcp.f32 %v1470_v8 }
 0x364   : > { %v2013_v19 = vpop.eup %2012  ;;  %1502 = vperm.xlu1 %2009, %v2011_v58   ;;  %2038 = vrcp.f32 %v1473_v40  ;;  %v1457_v58 = vld [vmem:[#allocation4 + $0x78] sm:$0xff] }
 0x365   : > { %v2015_v41 = vpop.eup %2014  ;;  %1492 = vperm.xlu0 %2008, %v2013_v19   ;;  %2040 = vrcp.f32 %v1472_v47  ;;  %v1456_v19 = vld [vmem:[#allocation4 + $0x70] sm:$0xff] }
 0x366   : > { %v2017_v61 = vpop.eup %2016 }
 0x367   : > { %v2019_v22 = vpop.eup %2018 }
 0x368   : > { %1507 = vperm.xlu1 %2009, %v2015_v41   ;;  %v2021_v9 = vpop.eup %2020 }
 0x369   : > { %1497 = vperm.xlu0 %2008, %v2017_v61   ;;  %v2023_v44 = vpop.eup %2022 }
 0x36a   : > { %v2025_v25 = vpop.eup %2024 }
 0x36b   : > { %v2027_v48 = vpop.eup %2026 }
 0x36c   : > { %1517 = vperm.xlu1 %2009, %v2019_v22   ;;  %v2029_v17 = vpop.eup %2028 }
 0x36d   : > { %1512 = vperm.xlu0 %2008, %v2021_v9   ;;  %v2031_v18 = vpop.eup %2030 }
 0x36e   : > { %v2033_v50 = vpop.eup %2032 }
 0x36f   : > { %v2035_v28 = vpop.eup %2034 }
 0x370   : > { %1527 = vperm.xlu1 %2009, %v2023_v44   ;;  %v2037_v59 = vpop.eup %2036 }
 0x371   : > { %1522 = vperm.xlu0 %2008, %v2025_v25   ;;  %v2039_v39 = vpop.eup %2038 }
 0x372   : > { %v2041_v60 = vpop.eup %2040 }
 0x374   : > { %1537 = vperm.xlu1 %2009, %v2027_v48  }
 0x375   : > { %1532 = vperm.xlu0 %2008, %v2029_v17  }
 0x378   : > { %1547 = vperm.xlu1 %2009, %v2031_v18  }
 0x379   : > { %1542 = vperm.xlu0 %2008, %v2033_v50  }
 0x37c   : > { %1557 = vperm.xlu1 %2009, %v2035_v28  }
 0x37d   : > { %1552 = vperm.xlu0 %2008, %v2037_v59  }
 0x380   : > { %1567 = vperm.xlu1 %2009, %v2039_v39  }
 0x381   : > { %1562 = vperm.xlu0 %2008, %v2041_v60  }
 0x3df   : > { %v1503_v15 = vpop.permute.xlu1 %1502 }
 0x3e0   : > { %v1572_v16 = vmul.f32 %v1503_v15, %v1444_v46  ;;  %v1493_v42 = vpop.permute.xlu0 %1492 }
 0x3e1   : > { %v1570_v6 = vmul.f32 %v1493_v42, %v1442_v2 }
 0x3e2   : > { %1588 = vst.msk [vmem:[%s2202_s6 + $0x10] sm:$0xff] %vm421_vm2, %v1572_v16 }
 0x3e3   : > { %1586 = vst.msk [vmem:[%s2202_s6] sm:$0xff] %vm421_vm2, %v1570_v6  ;;  %v1508_v1 = vpop.permute.xlu1 %1507 }
 0x3e4   : > { %v1573_v21 = vmul.f32 %v1508_v1, %v1445_v20  ;;  %v1498_v45 = vpop.permute.xlu0 %1497 }
 0x3e5   : > { %v1571_v55 = vmul.f32 %v1498_v45, %v1443_v33 }
 0x3e6   : > { %1589 = vst.msk [vmem:[%s2202_s6 + $0x18] sm:$0xff] %vm421_vm2, %v1573_v21 }
 0x3e7   : > { %1587 = vst.msk [vmem:[%s2202_s6 + $0x8] sm:$0xff] %vm421_vm2, %v1571_v55  ;;  %v1518_v13 = vpop.permute.xlu1 %1517 }
 0x3e8   : > { %v1575_v29 = vmul.f32 %v1518_v13, %v1447_v63  ;;  %v1513_v27 = vpop.permute.xlu0 %1512 }
 0x3e9   : > { %v1574_v23 = vmul.f32 %v1513_v27, %v1446_v7 }
 0x3ea   : > { %1591 = vst.msk [vmem:[%s2202_s6 + $0x28] sm:$0xff] %vm421_vm2, %v1575_v29 }
 0x3eb   : > { %1590 = vst.msk [vmem:[%s2202_s6 + $0x20] sm:$0xff] %vm421_vm2, %v1574_v23  ;;  %v1528_v30 = vpop.permute.xlu1 %1527 }
 0x3ec   : > { %v1577_v37 = vmul.f32 %v1528_v30, %v1449_v56  ;;  %v1523_v49 = vpop.permute.xlu0 %1522 }
 0x3ed   : > { %v1576_v0 = vmul.f32 %v1523_v49, %v1448_v3 }
 0x3ee   : > { %1593 = vst.msk [vmem:[%s2202_s6 + $0x38] sm:$0xff] %vm421_vm2, %v1577_v37 }
 0x3ef   : > { %1592 = vst.msk [vmem:[%s2202_s6 + $0x30] sm:$0xff] %vm421_vm2, %v1576_v0  ;;  %v1538_v24 = vpop.permute.xlu1 %1537 }
 0x3f0   : > { %v1579_v57 = vmul.f32 %v1538_v24, %v1451_v14  ;;  %v1533_v5 = vpop.permute.xlu0 %1532 }
 0x3f1   : > { %v1578_v32 = vmul.f32 %v1533_v5, %v1450_v36 }
 0x3f2   : > { %1595 = vst.msk [vmem:[%s2202_s6 + $0x48] sm:$0xff] %vm421_vm2, %v1579_v57 }
 0x3f3   : > { %1594 = vst.msk [vmem:[%s2202_s6 + $0x40] sm:$0xff] %vm421_vm2, %v1578_v32  ;;  %v1548_v34 = vpop.permute.xlu1 %1547 }
 0x3f4   : > { %v1581_v35 = vmul.f32 %v1548_v34, %v1453_v11  ;;  %v1543_v10 = vpop.permute.xlu0 %1542 }
 0x3f5   : > { %v1580_v51 = vmul.f32 %v1543_v10, %v1452_v62 }
 0x3f6   : > { %1597 = vst.msk [vmem:[%s2202_s6 + $0x58] sm:$0xff] %vm421_vm2, %v1581_v35 }
 0x3f7   : > { %1596 = vst.msk [vmem:[%s2202_s6 + $0x50] sm:$0xff] %vm421_vm2, %v1580_v51  ;;  %v1558_v12 = vpop.permute.xlu1 %1557 }
 0x3f8   : > { %v1583_v38 = vmul.f32 %v1558_v12, %v1455_v4  ;;  %v1553_v53 = vpop.permute.xlu0 %1552 }
 0x3f9   : > { %v1582_v43 = vmul.f32 %v1553_v53, %v1454_v52 }
 0x3fa   : > { %1599 = vst.msk [vmem:[%s2202_s6 + $0x68] sm:$0xff] %vm421_vm2, %v1583_v38 }
 0x3fb   : > { %1598 = vst.msk [vmem:[%s2202_s6 + $0x60] sm:$0xff] %vm421_vm2, %v1582_v43  ;;  %v1568_v41 = vpop.permute.xlu1 %1567 }
 0x3fc   : > { %v1585_v31 = vmul.f32 %v1568_v41, %v1457_v58  ;;  %v1563_v61 = vpop.permute.xlu0 %1562 }
 0x3fd   : > { %v1584_v26 = vmul.f32 %v1563_v61, %v1456_v19 }
 0x3fe   : > { %1601 = vst.msk [vmem:[%s2202_s6 + $0x78] sm:$0xff] %vm421_vm2, %v1585_v31 }
 0x3ff   : > { %1600 = vst.msk [vmem:[%s2202_s6 + $0x70] sm:$0xff] %vm421_vm2, %v1584_v26 }
 0x400 PF: > { %s14_s21 = sadd.s32 1, %s2096_s21   ;;  %s2986_s15 = smov %s2076_s16 }
 0x401   : > { %p11_p0 = scmp.ge.s32.totalorder %s14_s21, 6   ;;  %s2987_s16 = smov %s2180_s28 }
 0x402   : > { %s2988_s17 = smov %s2088_s19  ;;  %s2989_s18 = smov %s2092_s20 }
 0x403   : > { %s2990_s19 = smov %s2993_s22  ;;  %s2991_s20 = smov %s2997_s23 }
 0x404   :  { %13 = sbr.rel (!%p11_p0) target bundleno = 4 (0x4), region = 123 }

</bundles_post_ra>
